<compile_context>
chip_gen: v6e
topology: v6e:2x2x1
jax: 0.10.0
libtpu: 0.0.40
codegen_flags: <defaults>
</compile_context>

<pallas_src>
import jax
import jax.numpy as jnp
from jax.experimental import pallas as pl
from jax.experimental.pallas import tpu as pltpu
import numpy as np

SELU_ALPHA = 1.6732632423543772
SELU_SCALE = 1.0507009873554805
BN_EPS = 1e-5
_MAX_UNROLL_T = 32      # fully unroll the recurrence for sequences up to this length


def _selu(y):
    return SELU_SCALE * jnp.where(y > 0, y, SELU_ALPHA * (jnp.exp(y) - 1.0))


def point_seq_binary_kernel(maxlen_ref,                       # SMEM scalar prefetch, (1,) int32
                            x_ref, len_ref, avg_ref, wavg_ref,
                            wih_ref, whh_ref, bhn_ref,
                            *rest):
    """rest = [w, b] * n_fc_layers + [out_ref, gi_scratch, h_scratch]."""
    out_ref, gi_ref, h_ref = rest[-3], rest[-2], rest[-1]
    layer_refs = rest[:-3]

    TB = len_ref.shape[0]
    H = whh_ref.shape[0]
    T = x_ref.shape[0] // TB

    lengths = len_ref[...]                                    # (TB, 1) int32
    whh = whh_ref[...]                                        # (H, 3H) f32 (kept f32: no h drift)
    # n-gate recurrent bias, broadcast hoisted ONCE off the serial critical path.
    bhn = jnp.broadcast_to(bhn_ref[...], (TB, H))             # (TB, H)

    # h0 = avg_fc(avg); bias folded into the last row of the augmented weight.
    h_ref[...] = jnp.dot(avg_ref[...], wavg_ref[...],
                         preferred_element_type=jnp.float32)

    # ---- ONE fused input-gate matmul for all timesteps: (T*TB, Da) @ (Da, 3H).
    # x carries a ones column, so b_ih (+ the r/z parts of b_hh) ride in the last
    # row of wih: no per-step bias adds or broadcasts in the recurrence.
    gi_ref[...] = jnp.dot(x_ref[...], wih_ref[...],
                          preferred_element_type=jnp.float32)

    def gru_step(t, row0):
        h = h_ref[...]                                        # (TB, H) f32
        gi_t = gi_ref[pl.ds(row0, TB), :]                     # (TB, 3H), rows of step t
        gh = jnp.dot(h, whh, preferred_element_type=jnp.float32)   # one MXU matmul / step
        r = jax.nn.sigmoid(gi_t[:, 0:H] + gh[:, 0:H])
        z = jax.nn.sigmoid(gi_t[:, H:2 * H] + gh[:, H:2 * H])
        n = jnp.tanh(gi_t[:, 2 * H:] + r * (gh[:, 2 * H:] + bhn))
        h_new = (1.0 - z) * n + z * h
        # pack_padded_sequence semantics: freeze rows whose length has run out.
        h_ref[...] = jnp.where(t < lengths, h_new, h)

    if T <= _MAX_UNROLL_T:
        # Fully unrolled, NO per-step scf.if gate: the per-row length mask alone
        # guarantees correctness and padded tail steps are cheap at small T.
        for t in range(T):
            gru_step(t, t * TB)
    else:
        # Long sequences: bound the serial loop by max(lengths) (scalar prefetch).
        # gi was computed for all T above, so there is no stale-data hazard for
        # t >= num_steps even though those rows are never read.
        num_steps = maxlen_ref[0]

        @pl.loop(0, num_steps)
        def _(t):
            gru_step(t, pl.multiple_of(t * TB, TB))

    # MLP head: Dropout (inference no-op) -> Linear (BatchNorm folded) -> SELU,
    # repeated per layer, then sigmoid.
    y = h_ref[...]
    for i in range(len(layer_refs) // 2):
        w = layer_refs[2 * i][...]
        b = layer_refs[2 * i + 1][...]
        y = _selu(jnp.dot(y, w, preferred_element_type=jnp.float32) + b)
    # Lane-dense store: batch sits on the 128-lane axis (avoids width-1 vst.msk).
    out_ref[...] = jnp.transpose(jax.nn.sigmoid(y)).astype(out_ref.dtype)


def init_params(key, input_size, hidden_size, fc_point_seq):
    """Deterministic parameter init mirroring the PyTorch module's shapes."""
    ks = list(jax.random.split(key, 32))
    k = iter(ks)
    u = lambda kk, shape, s=0.3: jax.random.uniform(kk, shape, jnp.float32, -s, s)
    H, D = hidden_size, input_size
    params = {
        # nn.GRU(D, H): weight_ih (3H, D), weight_hh (3H, H), biases (3H,) [r,z,n]
        "w_ih": u(next(k), (3 * H, D)),
        "w_hh": u(next(k), (3 * H, H)),
        "b_ih": u(next(k), (3 * H,)),
        "b_hh": u(next(k), (3 * H,)),
        # avg_fc: Linear(D-1, H)
        "w_avg": u(next(k), (H, D - 1)),
        "b_avg": u(next(k), (H,)),
        "layers": [],
    }
    fc = [H] + list(fc_point_seq)
    for i in range(len(fc) - 1):
        fin, fout = fc[i], fc[i + 1]
        params["layers"].append({
            "w": u(next(k), (fout, fin)),                 # Linear weight (out, in)
            "b": u(next(k), (fout,)),
            "gamma": 1.0 + u(next(k), (fout,), 0.1),      # BatchNorm1d params
            "beta": u(next(k), (fout,), 0.1),
            "mean": u(next(k), (fout,), 0.1),             # running stats (eval mode)
            "var": 1.0 + u(next(k), (fout,), 0.1),
        })
    return params


def _pick_batch_tile(b_pad, t_len, hidden, da, x_itemsize):
    """Largest lane-dense (multiple-of-128) batch tile giving >= 2 grid steps
    within the VMEM budget (sized for v7x's 64 MiB); else the whole batch."""
    def tile_bytes(tb):
        return (t_len * tb * 3 * hidden * 4          # gi scratch (f32)
                + 2 * t_len * tb * da * x_itemsize   # double-buffered x block
                + tb * hidden * 4)                   # h scratch
    budget = 12 << 20
    cands = [c for c in range(128, b_pad // 2 + 1, 128)
             if b_pad % c == 0 and tile_bytes(c) <= budget]
    if cands:
        return max(cands)
    # TODO(synk): for huge B*T that overflows VMEM even at TB=b_pad, stream gi
    # through a time grid axis (pl.Buffered(2) chunks) instead of a full scratch.
    return b_pad


def point_seq_binary_forward(params, x_input, lengths, avg, *, use_bf16=True):
    """x_input: (B, T, D) batch_first (as in PyTorch), lengths: (B,), avg: (B, D-1)."""
    B, T, D = x_input.shape
    H = params["w_avg"].shape[0]
    Da = D + 1                                            # augmented x width (ones column)
    Dv = avg.shape[1] + 1                                 # augmented avg width
    cdt = jnp.bfloat16 if use_bf16 else jnp.float32
    x_itemsize = 2 if use_bf16 else 4

    # Pad batch to a sublane multiple (8): pad rows get length 0 (frozen at h0).
    B_pad = max(8, ((B + 7) // 8) * 8)
    TB = _pick_batch_tile(B_pad, T, H, Da, x_itemsize)
    nb = B_pad // TB

    # Time-major x, zero-pad batch, append ones column (bias carrier), bf16 stream,
    # and lay out per batch-tile as a flat (T*TB, Da) slab with time-major rows.
    x_tm = jnp.transpose(x_input, (1, 0, 2)).astype(jnp.float32)          # (T, B, D)
    if B_pad > B:
        x_tm = jnp.concatenate(
            [x_tm, jnp.zeros((T, B_pad - B, D), jnp.float32)], axis=1)
    x_aug = jnp.concatenate([x_tm, jnp.ones((T, B_pad, 1), jnp.float32)],
                            axis=-1).astype(cdt)                          # (T, B_pad, Da)
    x_tiled = (x_aug.reshape(T, nb, TB, Da)
                    .transpose(1, 0, 2, 3)
                    .reshape(nb, T * TB, Da))                             # (nb, T*TB, Da)

    lengths_i = lengths.astype(jnp.int32)
    len_pad = jnp.pad(lengths_i, (0, B_pad - B))
    len2d = len_pad.reshape(B_pad, 1)
    max_len = jnp.minimum(jnp.max(lengths_i), T).astype(jnp.int32).reshape(1)

    # avg_fc bias folded into an augmented weight row.
    avg_f = jnp.pad(avg.astype(jnp.float32), ((0, B_pad - B), (0, 0)))
    avg_aug = jnp.concatenate([avg_f, jnp.ones((B_pad, 1), jnp.float32)], axis=1)
    w_avg_aug = jnp.concatenate(
        [params["w_avg"].T, params["b_avg"].reshape(1, H)], axis=0
    ).astype(jnp.float32)                                                  # (Dv, H)

    # Fused, pre-transposed GRU gate weights ([r|z|n] columns), augmented with a
    # bias row = b_ih + [b_hh_r, b_hh_z, 0]; the n-gate recurrent bias stays
    # separate because it is multiplied by r inside the cell.
    bias_row = params["b_ih"] + jnp.concatenate(
        [params["b_hh"][:2 * H], jnp.zeros((H,), jnp.float32)])
    wih_aug = jnp.concatenate(
        [params["w_ih"].T, bias_row.reshape(1, 3 * H)], axis=0).astype(cdt)  # (Da, 3H)
    whh = params["w_hh"].T.astype(jnp.float32)                               # (H, 3H) f32
    b_hhn = params["b_hh"][2 * H:].reshape(1, H).astype(jnp.float32)

    # Fold BatchNorm1d (eval) into each Linear: W' = W^T*scale, b' = (b-mean)*scale+beta.
    layer_args = []
    fc_out = H
    for lp in params["layers"]:
        fout = lp["w"].shape[0]
        scale = lp["gamma"] / jnp.sqrt(lp["var"] + BN_EPS)
        w_fold = (lp["w"].T * scale[None, :]).astype(jnp.float32)          # (fin, fout)
        b_fold = ((lp["b"] - lp["mean"]) * scale + lp["beta"]
                  ).reshape(1, fout).astype(jnp.float32)
        layer_args += [w_fold, b_fold]
        fc_out = fout

    weight_args = [avg_aug, w_avg_aug, wih_aug, whh, b_hhn] + layer_args

    in_specs = [
        pl.BlockSpec((None, T * TB, Da), lambda b, ml: (b, 0, 0)),    # x tile (flat rows)
        pl.BlockSpec((TB, 1), lambda b, ml: (b, 0)),                  # lengths
        pl.BlockSpec((TB, Dv), lambda b, ml: (b, 0)),                 # avg (augmented)
        pl.BlockSpec((Dv, H), lambda b, ml: (0, 0)),                  # avg_fc weight (aug)
        pl.BlockSpec((Da, 3 * H), lambda b, ml: (0, 0)),              # W_ih fused (aug bias row)
        pl.BlockSpec((H, 3 * H), lambda b, ml: (0, 0)),               # W_hh fused (f32)
        pl.BlockSpec((1, H), lambda b, ml: (0, 0)),                   # b_hh (n gate)
    ]
    for a in layer_args:
        in_specs.append(pl.BlockSpec(a.shape, lambda b, ml: (0, 0)))

    grid_spec = pltpu.PrefetchScalarGridSpec(
        num_scalar_prefetch=1,                                        # max_len -> SMEM
        grid=(nb,),
        in_specs=in_specs,
        out_specs=pl.BlockSpec((fc_out, TB), lambda b, ml: (0, b)),   # lane-dense: batch on lanes
        scratch_shapes=[
            pltpu.VMEM((T * TB, 3 * H), jnp.float32),   # hoisted input-gate pre-activations
            pltpu.VMEM((TB, H), jnp.float32),           # GRU hidden state
        ],
    )

    # Explicit VMEM budget (sized so one tiling works on v7x's 64 MiB as well).
    approx = (T * TB * 3 * H * 4 + TB * H * 4 + 2 * T * TB * Da * x_itemsize
              + 2 * sum(int(np.prod(a.shape)) * a.dtype.itemsize for a in weight_args))
    vmem_limit = int(min(max(2 * approx + (8 << 20), 16 << 20), 48 << 20))

    out = pl.pallas_call(
        point_seq_binary_kernel,
        out_shape=jax.ShapeDtypeStruct((fc_out, B_pad), jnp.float32),
        grid_spec=grid_spec,
        compiler_params=pltpu.CompilerParams(
            dimension_semantics=("parallel",),
            vmem_limit_bytes=vmem_limit),
    )(max_len, x_tiled, len2d, avg_aug, w_avg_aug, wih_aug, whh, b_hhn, *layer_args)

    # Undo the lane-dense layout and batch padding; x.squeeze(-1) in PyTorch forward.
    return out[0, :B] if fc_out == 1 else out[:, :B].T


def reference_forward(params, x_input, lengths, avg):
    """Pure-JAX f32 reference reproducing the PyTorch semantics (eval mode)."""
    B, T, D = x_input.shape
    H = params["w_avg"].shape[0]
    h = avg.astype(jnp.float32) @ params["w_avg"].T + params["b_avg"]
    w_ih, w_hh, b_ih, b_hh = (params["w_ih"], params["w_hh"],
                              params["b_ih"], params["b_hh"])
    for t in range(T):
        x_t = x_input[:, t, :].astype(jnp.float32)
        gi = x_t @ w_ih.T + b_ih
        gh = h @ w_hh.T + b_hh
        r = jax.nn.sigmoid(gi[:, 0:H] + gh[:, 0:H])
        z = jax.nn.sigmoid(gi[:, H:2 * H] + gh[:, H:2 * H])
        n = jnp.tanh(gi[:, 2 * H:] + r * gh[:, 2 * H:])
        h_new = (1.0 - z) * n + z * h
        mask = (t < lengths).reshape(B, 1)
        h = jnp.where(mask, h_new, h)
    y = h
    for lp in params["layers"]:
        y = y @ lp["w"].T + lp["b"]
        y = (y - lp["mean"]) / jnp.sqrt(lp["var"] + BN_EPS) * lp["gamma"] + lp["beta"]
        y = _selu(y)
    return jax.nn.sigmoid(y)[:, 0]


if __name__ == "__main__":
    # Small shapes consistent with the module:
    #   args.input_size=4, args.hidden_size_point_seq=32, args.fc_point_seq=[16, 1]
    B, T, D, H = 2, 8, 4, 32
    fc_point_seq = [16, 1]

    key = jax.random.PRNGKey(0)
    k_param, k_x, k_avg = jax.random.split(key, 3)

    params = init_params(k_param, D, H, fc_point_seq)
    x_input = jax.random.normal(k_x, (B, T, D), jnp.float32)     # batch_first (B, T, D)
    lengths = jnp.array([T, 5], dtype=jnp.int32)                 # padded lengths per batch
    avg = jax.random.normal(k_avg, (B, D - 1), jnp.float32)

    ref = reference_forward(params, x_input, lengths, avg)

    # f32-operand path: tight check against the pure-JAX reference.
    out_f32 = jax.block_until_ready(
        point_seq_binary_forward(params, x_input, lengths, avg, use_bf16=False))
    np.testing.assert_allclose(np.asarray(out_f32), np.asarray(ref),
                               atol=2e-3, rtol=2e-3)

    # Fast (default) path: bf16 x/W_ih MXU operands change numerics slightly.
    out = jax.block_until_ready(
        point_seq_binary_forward(params, x_input, lengths, avg, use_bf16=True))
    np.testing.assert_allclose(np.asarray(out), np.asarray(ref),
                               atol=5e-2, rtol=5e-2)

    print("KERNEL_OK")
</pallas_src>

<mosaic_0001>
module attributes {stable_mosaic.version = 11 : i64} {
  func.func @point_seq_binary_kernel(%arg0: i32, %arg1: memref<1xi32, #tpu.memory_space<smem>>, %arg2: memref<1x64x5xf32, #tpu.memory_space<vmem>>, %arg3: memref<8x1xi32, #tpu.memory_space<vmem>>, %arg4: memref<8x4xf32, #tpu.memory_space<vmem>>, %arg5: memref<4x32xf32, #tpu.memory_space<vmem>>, %arg6: memref<5x96xf32, #tpu.memory_space<vmem>>, %arg7: memref<32x96xf32, #tpu.memory_space<vmem>>, %arg8: memref<1x32xf32, #tpu.memory_space<vmem>>, %arg9: memref<32x16xf32, #tpu.memory_space<vmem>>, %arg10: memref<1x16xf32, #tpu.memory_space<vmem>>, %arg11: memref<16x1xf32, #tpu.memory_space<vmem>>, %arg12: memref<1x1xf32, #tpu.memory_space<vmem>>, %arg13: memref<1x8xf32, #tpu.memory_space<vmem>>, %arg14: memref<64x96xf32, #tpu.memory_space<vmem>>, %arg15: memref<8x32xf32, #tpu.memory_space<vmem>>) attributes {dimension_semantics = [#tpu.dimension_semantics<parallel>], iteration_bounds = array<i64: 1>, scalar_prefetch = 1 : i64, scratch_operands = 2 : i64, tpu.core_type = #tpu.core_type<tc>, window_params = [{transform_indices = @transform_0, window_bounds = array<i64: 1, 64, 5>}, {transform_indices = @transform_1, window_bounds = array<i64: 8, 1>}, {transform_indices = @transform_2, window_bounds = array<i64: 8, 4>}, {pipeline_mode = #tpu.pipeline_mode<synchronous>, transform_indices = @transform_3, window_bounds = array<i64: 4, 32>}, {pipeline_mode = #tpu.pipeline_mode<synchronous>, transform_indices = @transform_4, window_bounds = array<i64: 5, 96>}, {pipeline_mode = #tpu.pipeline_mode<synchronous>, transform_indices = @transform_5, window_bounds = array<i64: 32, 96>}, {pipeline_mode = #tpu.pipeline_mode<synchronous>, transform_indices = @transform_6, window_bounds = array<i64: 1, 32>}, {pipeline_mode = #tpu.pipeline_mode<synchronous>, transform_indices = @transform_7, window_bounds = array<i64: 32, 16>}, {pipeline_mode = #tpu.pipeline_mode<synchronous>, transform_indices = @transform_8, window_bounds = array<i64: 1, 16>}, {pipeline_mode = #tpu.pipeline_mode<synchronous>, transform_indices = @transform_9, window_bounds = array<i64: 16, 1>}, {pipeline_mode = #tpu.pipeline_mode<synchronous>, transform_indices = @transform_10, window_bounds = array<i64: 1, 1>}, {transform_indices = @transform_11, window_bounds = array<i64: 1, 8>}]} {
    %c0 = arith.constant 0 : index
    %c0_0 = arith.constant 0 : index
    %0 = vector.load %arg3[%c0, %c0_0] : memref<8x1xi32, #tpu.memory_space<vmem>>, vector<8x1xi32>
    %c0_1 = arith.constant 0 : index
    %c0_2 = arith.constant 0 : index
    %1 = vector.load %arg7[%c0_1, %c0_2] : memref<32x96xf32, #tpu.memory_space<vmem>>, vector<32x96xf32>
    %c0_3 = arith.constant 0 : index
    %c0_4 = arith.constant 0 : index
    %2 = vector.load %arg8[%c0_3, %c0_4] : memref<1x32xf32, #tpu.memory_space<vmem>>, vector<1x32xf32>
    %3 = vector.shape_cast %2 : vector<1x32xf32> to vector<1x32xf32>
    %4 = vector.broadcast %3 : vector<1x32xf32> to vector<8x32xf32>
    %c0_5 = arith.constant 0 : index
    %c0_6 = arith.constant 0 : index
    %5 = vector.load %arg4[%c0_5, %c0_6] : memref<8x4xf32, #tpu.memory_space<vmem>>, vector<8x4xf32>
    %c0_7 = arith.constant 0 : index
    %c0_8 = arith.constant 0 : index
    %6 = vector.load %arg5[%c0_7, %c0_8] : memref<4x32xf32, #tpu.memory_space<vmem>>, vector<4x32xf32>
    %cst = arith.constant dense<0.000000e+00> : vector<8x32xf32>
    %7 = tpu.matmul %5, %6, %cst {dimension_numbers = #tpu.dot_dimension_numbers<[1], [0], [0], [1], [0, 0, 1, 1], [], []>} : vector<8x4xf32>, vector<4x32xf32>, vector<8x32xf32> -> vector<8x32xf32>
    %c0_9 = arith.constant 0 : index
    %c0_10 = arith.constant 0 : index
    %8 = vector.load %arg15[%c0_9, %c0_10] : memref<8x32xf32, #tpu.memory_space<vmem>>, vector<8x32xf32>
    tpu.vector_store %arg15[%c0_9, %c0_10], %7 {strides = array<i32>} : memref<8x32xf32, #tpu.memory_space<vmem>>, vector<8x32xf32>,
    %c0_11 = arith.constant 0 : index
    %c0_12 = arith.constant 0 : index
    %c0_13 = arith.constant 0 : index
    %9 = vector.load %arg2[%c0_11, %c0_12, %c0_13] : memref<1x64x5xf32, #tpu.memory_space<vmem>>, vector<1x64x5xf32>
    %10 = vector.shape_cast %9 : vector<1x64x5xf32> to vector<64x5xf32>
    %c0_14 = arith.constant 0 : index
    %c0_15 = arith.constant 0 : index
    %11 = vector.load %arg6[%c0_14, %c0_15] : memref<5x96xf32, #tpu.memory_space<vmem>>, vector<5x96xf32>
    %cst_16 = arith.constant dense<0.000000e+00> : vector<64x96xf32>
    %12 = tpu.matmul %10, %11, %cst_16 {dimension_numbers = #tpu.dot_dimension_numbers<[1], [0], [0], [1], [0, 0, 1, 1], [], []>} : vector<64x5xf32>, vector<5x96xf32>, vector<64x96xf32> -> vector<64x96xf32>
    %c0_17 = arith.constant 0 : index
    %c0_18 = arith.constant 0 : index
    %13 = vector.load %arg14[%c0_17, %c0_18] : memref<64x96xf32, #tpu.memory_space<vmem>>, vector<64x96xf32>
    tpu.vector_store %arg14[%c0_17, %c0_18], %12 {strides = array<i32>} : memref<64x96xf32, #tpu.memory_space<vmem>>, vector<64x96xf32>,
    %c0_19 = arith.constant 0 : index
    %c0_20 = arith.constant 0 : index
    %14 = vector.load %arg15[%c0_19, %c0_20] : memref<8x32xf32, #tpu.memory_space<vmem>>, vector<8x32xf32>
    %c0_21 = arith.constant 0 : index
    %c0_22 = arith.constant 0 : index
    %15 = vector.load %arg14[%c0_21, %c0_22] : memref<64x96xf32, #tpu.memory_space<vmem>>, vector<8x96xf32>
    %cst_23 = arith.constant dense<0.000000e+00> : vector<8x96xf32>
    %16 = tpu.matmul %14, %1, %cst_23 {dimension_numbers = #tpu.dot_dimension_numbers<[1], [0], [0], [1], [0, 0, 1, 1], [], []>} : vector<8x32xf32>, vector<32x96xf32>, vector<8x96xf32> -> vector<8x96xf32>
    %17 = vector.extract_strided_slice %15 {offsets = [0, 0], sizes = [8, 32], strides = [1, 1]} : vector<8x96xf32> to vector<8x32xf32>
    %18 = vector.extract_strided_slice %16 {offsets = [0, 0], sizes = [8, 32], strides = [1, 1]} : vector<8x96xf32> to vector<8x32xf32>
    %19 = arith.addf %17, %18 : vector<8x32xf32>
    %20 = arith.negf %19 : vector<8x32xf32>
    %21 = math.exp %20 : vector<8x32xf32>
    %cst_24 = arith.constant 1.000000e+00 : f32
    %22 = vector.broadcast %cst_24 : f32 to vector<8x32xf32>
    %23 = arith.addf %22, %21 : vector<8x32xf32>
    %24 = arith.divf %22, %23 : vector<8x32xf32>
    %25 = vector.extract_strided_slice %15 {offsets = [0, 32], sizes = [8, 32], strides = [1, 1]} : vector<8x96xf32> to vector<8x32xf32>
    %26 = vector.extract_strided_slice %16 {offsets = [0, 32], sizes = [8, 32], strides = [1, 1]} : vector<8x96xf32> to vector<8x32xf32>
    %27 = arith.addf %25, %26 : vector<8x32xf32>
    %28 = arith.negf %27 : vector<8x32xf32>
    %29 = math.exp %28 : vector<8x32xf32>
    %cst_25 = arith.constant 1.000000e+00 : f32
    %30 = vector.broadcast %cst_25 : f32 to vector<8x32xf32>
    %31 = arith.addf %30, %29 : vector<8x32xf32>
    %32 = arith.divf %30, %31 : vector<8x32xf32>
    %33 = vector.extract_strided_slice %15 {offsets = [0, 64], sizes = [8, 32], strides = [1, 1]} : vector<8x96xf32> to vector<8x32xf32>
    %34 = vector.extract_strided_slice %16 {offsets = [0, 64], sizes = [8, 32], strides = [1, 1]} : vector<8x96xf32> to vector<8x32xf32>
    %35 = arith.addf %34, %4 : vector<8x32xf32>
    %36 = arith.mulf %24, %35 : vector<8x32xf32>
    %37 = arith.addf %33, %36 : vector<8x32xf32>
    %38 = math.tanh %37 : vector<8x32xf32>
    %cst_26 = arith.constant 1.000000e+00 : f32
    %39 = vector.broadcast %cst_26 : f32 to vector<8x32xf32>
    %40 = arith.subf %39, %32 : vector<8x32xf32>
    %41 = arith.mulf %40, %38 : vector<8x32xf32>
    %42 = arith.mulf %32, %14 : vector<8x32xf32>
    %43 = arith.addf %41, %42 : vector<8x32xf32>
    %c0_i32 = arith.constant 0 : i32
    %44 = vector.broadcast %c0_i32 : i32 to vector<8x1xi32>
    %45 = arith.cmpi sgt, %0, %44 : vector<8x1xi32>
    %46 = vector.shape_cast %45 : vector<8x1xi1> to vector<8x1xi1>
    %47 = vector.broadcast %46 : vector<8x1xi1> to vector<8x32xi1>
    %48 = arith.select %47, %43, %14 : vector<8x32xi1>, vector<8x32xf32>
    %c0_27 = arith.constant 0 : index
    %c0_28 = arith.constant 0 : index
    %49 = vector.load %arg15[%c0_27, %c0_28] : memref<8x32xf32, #tpu.memory_space<vmem>>, vector<8x32xf32>
    tpu.vector_store %arg15[%c0_27, %c0_28], %48 {strides = array<i32>} : memref<8x32xf32, #tpu.memory_space<vmem>>, vector<8x32xf32>,
    %c0_29 = arith.constant 0 : index
    %c0_30 = arith.constant 0 : index
    %50 = vector.load %arg15[%c0_29, %c0_30] : memref<8x32xf32, #tpu.memory_space<vmem>>, vector<8x32xf32>
    %c8 = arith.constant 8 : index
    %c0_31 = arith.constant 0 : index
    %51 = vector.load %arg14[%c8, %c0_31] : memref<64x96xf32, #tpu.memory_space<vmem>>, vector<8x96xf32>
    %cst_32 = arith.constant dense<0.000000e+00> : vector<8x96xf32>
    %52 = tpu.matmul %50, %1, %cst_32 {dimension_numbers = #tpu.dot_dimension_numbers<[1], [0], [0], [1], [0, 0, 1, 1], [], []>} : vector<8x32xf32>, vector<32x96xf32>, vector<8x96xf32> -> vector<8x96xf32>
    %53 = vector.extract_strided_slice %51 {offsets = [0, 0], sizes = [8, 32], strides = [1, 1]} : vector<8x96xf32> to vector<8x32xf32>
    %54 = vector.extract_strided_slice %52 {offsets = [0, 0], sizes = [8, 32], strides = [1, 1]} : vector<8x96xf32> to vector<8x32xf32>
    %55 = arith.addf %53, %54 : vector<8x32xf32>
    %56 = arith.negf %55 : vector<8x32xf32>
    %57 = math.exp %56 : vector<8x32xf32>
    %cst_33 = arith.constant 1.000000e+00 : f32
    %58 = vector.broadcast %cst_33 : f32 to vector<8x32xf32>
    %59 = arith.addf %58, %57 : vector<8x32xf32>
    %60 = arith.divf %58, %59 : vector<8x32xf32>
    %61 = vector.extract_strided_slice %51 {offsets = [0, 32], sizes = [8, 32], strides = [1, 1]} : vector<8x96xf32> to vector<8x32xf32>
    %62 = vector.extract_strided_slice %52 {offsets = [0, 32], sizes = [8, 32], strides = [1, 1]} : vector<8x96xf32> to vector<8x32xf32>
    %63 = arith.addf %61, %62 : vector<8x32xf32>
    %64 = arith.negf %63 : vector<8x32xf32>
    %65 = math.exp %64 : vector<8x32xf32>
    %cst_34 = arith.constant 1.000000e+00 : f32
    %66 = vector.broadcast %cst_34 : f32 to vector<8x32xf32>
    %67 = arith.addf %66, %65 : vector<8x32xf32>
    %68 = arith.divf %66, %67 : vector<8x32xf32>
    %69 = vector.extract_strided_slice %51 {offsets = [0, 64], sizes = [8, 32], strides = [1, 1]} : vector<8x96xf32> to vector<8x32xf32>
    %70 = vector.extract_strided_slice %52 {offsets = [0, 64], sizes = [8, 32], strides = [1, 1]} : vector<8x96xf32> to vector<8x32xf32>
    %71 = arith.addf %70, %4 : vector<8x32xf32>
    %72 = arith.mulf %60, %71 : vector<8x32xf32>
    %73 = arith.addf %69, %72 : vector<8x32xf32>
    %74 = math.tanh %73 : vector<8x32xf32>
    %cst_35 = arith.constant 1.000000e+00 : f32
    %75 = vector.broadcast %cst_35 : f32 to vector<8x32xf32>
    %76 = arith.subf %75, %68 : vector<8x32xf32>
    %77 = arith.mulf %76, %74 : vector<8x32xf32>
    %78 = arith.mulf %68, %50 : vector<8x32xf32>
    %79 = arith.addf %77, %78 : vector<8x32xf32>
    %c1_i32 = arith.constant 1 : i32
    %80 = vector.broadcast %c1_i32 : i32 to vector<8x1xi32>
    %81 = arith.cmpi sgt, %0, %80 : vector<8x1xi32>
    %82 = vector.shape_cast %81 : vector<8x1xi1> to vector<8x1xi1>
    %83 = vector.broadcast %82 : vector<8x1xi1> to vector<8x32xi1>
    %84 = arith.select %83, %79, %50 : vector<8x32xi1>, vector<8x32xf32>
    %c0_36 = arith.constant 0 : index
    %c0_37 = arith.constant 0 : index
    %85 = vector.load %arg15[%c0_36, %c0_37] : memref<8x32xf32, #tpu.memory_space<vmem>>, vector<8x32xf32>
    tpu.vector_store %arg15[%c0_36, %c0_37], %84 {strides = array<i32>} : memref<8x32xf32, #tpu.memory_space<vmem>>, vector<8x32xf32>,
    %c0_38 = arith.constant 0 : index
    %c0_39 = arith.constant 0 : index
    %86 = vector.load %arg15[%c0_38, %c0_39] : memref<8x32xf32, #tpu.memory_space<vmem>>, vector<8x32xf32>
    %c16 = arith.constant 16 : index
    %c0_40 = arith.constant 0 : index
    %87 = vector.load %arg14[%c16, %c0_40] : memref<64x96xf32, #tpu.memory_space<vmem>>, vector<8x96xf32>
    %cst_41 = arith.constant dense<0.000000e+00> : vector<8x96xf32>
    %88 = tpu.matmul %86, %1, %cst_41 {dimension_numbers = #tpu.dot_dimension_numbers<[1], [0], [0], [1], [0, 0, 1, 1], [], []>} : vector<8x32xf32>, vector<32x96xf32>, vector<8x96xf32> -> vector<8x96xf32>
    %89 = vector.extract_strided_slice %87 {offsets = [0, 0], sizes = [8, 32], strides = [1, 1]} : vector<8x96xf32> to vector<8x32xf32>
    %90 = vector.extract_strided_slice %88 {offsets = [0, 0], sizes = [8, 32], strides = [1, 1]} : vector<8x96xf32> to vector<8x32xf32>
    %91 = arith.addf %89, %90 : vector<8x32xf32>
    %92 = arith.negf %91 : vector<8x32xf32>
    %93 = math.exp %92 : vector<8x32xf32>
    %cst_42 = arith.constant 1.000000e+00 : f32
    %94 = vector.broadcast %cst_42 : f32 to vector<8x32xf32>
    %95 = arith.addf %94, %93 : vector<8x32xf32>
    %96 = arith.divf %94, %95 : vector<8x32xf32>
    %97 = vector.extract_strided_slice %87 {offsets = [0, 32], sizes = [8, 32], strides = [1, 1]} : vector<8x96xf32> to vector<8x32xf32>
    %98 = vector.extract_strided_slice %88 {offsets = [0, 32], sizes = [8, 32], strides = [1, 1]} : vector<8x96xf32> to vector<8x32xf32>
    %99 = arith.addf %97, %98 : vector<8x32xf32>
    %100 = arith.negf %99 : vector<8x32xf32>
    %101 = math.exp %100 : vector<8x32xf32>
    %cst_43 = arith.constant 1.000000e+00 : f32
    %102 = vector.broadcast %cst_43 : f32 to vector<8x32xf32>
    %103 = arith.addf %102, %101 : vector<8x32xf32>
    %104 = arith.divf %102, %103 : vector<8x32xf32>
    %105 = vector.extract_strided_slice %87 {offsets = [0, 64], sizes = [8, 32], strides = [1, 1]} : vector<8x96xf32> to vector<8x32xf32>
    %106 = vector.extract_strided_slice %88 {offsets = [0, 64], sizes = [8, 32], strides = [1, 1]} : vector<8x96xf32> to vector<8x32xf32>
    %107 = arith.addf %106, %4 : vector<8x32xf32>
    %108 = arith.mulf %96, %107 : vector<8x32xf32>
    %109 = arith.addf %105, %108 : vector<8x32xf32>
    %110 = math.tanh %109 : vector<8x32xf32>
    %cst_44 = arith.constant 1.000000e+00 : f32
    %111 = vector.broadcast %cst_44 : f32 to vector<8x32xf32>
    %112 = arith.subf %111, %104 : vector<8x32xf32>
    %113 = arith.mulf %112, %110 : vector<8x32xf32>
    %114 = arith.mulf %104, %86 : vector<8x32xf32>
    %115 = arith.addf %113, %114 : vector<8x32xf32>
    %c2_i32 = arith.constant 2 : i32
    %116 = vector.broadcast %c2_i32 : i32 to vector<8x1xi32>
    %117 = arith.cmpi sgt, %0, %116 : vector<8x1xi32>
    %118 = vector.shape_cast %117 : vector<8x1xi1> to vector<8x1xi1>
    %119 = vector.broadcast %118 : vector<8x1xi1> to vector<8x32xi1>
    %120 = arith.select %119, %115, %86 : vector<8x32xi1>, vector<8x32xf32>
    %c0_45 = arith.constant 0 : index
    %c0_46 = arith.constant 0 : index
    %121 = vector.load %arg15[%c0_45, %c0_46] : memref<8x32xf32, #tpu.memory_space<vmem>>, vector<8x32xf32>
    tpu.vector_store %arg15[%c0_45, %c0_46], %120 {strides = array<i32>} : memref<8x32xf32, #tpu.memory_space<vmem>>, vector<8x32xf32>,
    %c0_47 = arith.constant 0 : index
    %c0_48 = arith.constant 0 : index
    %122 = vector.load %arg15[%c0_47, %c0_48] : memref<8x32xf32, #tpu.memory_space<vmem>>, vector<8x32xf32>
    %c24 = arith.constant 24 : index
    %c0_49 = arith.constant 0 : index
    %123 = vector.load %arg14[%c24, %c0_49] : memref<64x96xf32, #tpu.memory_space<vmem>>, vector<8x96xf32>
    %cst_50 = arith.constant dense<0.000000e+00> : vector<8x96xf32>
    %124 = tpu.matmul %122, %1, %cst_50 {dimension_numbers = #tpu.dot_dimension_numbers<[1], [0], [0], [1], [0, 0, 1, 1], [], []>} : vector<8x32xf32>, vector<32x96xf32>, vector<8x96xf32> -> vector<8x96xf32>
    %125 = vector.extract_strided_slice %123 {offsets = [0, 0], sizes = [8, 32], strides = [1, 1]} : vector<8x96xf32> to vector<8x32xf32>
    %126 = vector.extract_strided_slice %124 {offsets = [0, 0], sizes = [8, 32], strides = [1, 1]} : vector<8x96xf32> to vector<8x32xf32>
    %127 = arith.addf %125, %126 : vector<8x32xf32>
    %128 = arith.negf %127 : vector<8x32xf32>
    %129 = math.exp %128 : vector<8x32xf32>
    %cst_51 = arith.constant 1.000000e+00 : f32
    %130 = vector.broadcast %cst_51 : f32 to vector<8x32xf32>
    %131 = arith.addf %130, %129 : vector<8x32xf32>
    %132 = arith.divf %130, %131 : vector<8x32xf32>
    %133 = vector.extract_strided_slice %123 {offsets = [0, 32], sizes = [8, 32], strides = [1, 1]} : vector<8x96xf32> to vector<8x32xf32>
    %134 = vector.extract_strided_slice %124 {offsets = [0, 32], sizes = [8, 32], strides = [1, 1]} : vector<8x96xf32> to vector<8x32xf32>
    %135 = arith.addf %133, %134 : vector<8x32xf32>
    %136 = arith.negf %135 : vector<8x32xf32>
    %137 = math.exp %136 : vector<8x32xf32>
    %cst_52 = arith.constant 1.000000e+00 : f32
    %138 = vector.broadcast %cst_52 : f32 to vector<8x32xf32>
    %139 = arith.addf %138, %137 : vector<8x32xf32>
    %140 = arith.divf %138, %139 : vector<8x32xf32>
    %141 = vector.extract_strided_slice %123 {offsets = [0, 64], sizes = [8, 32], strides = [1, 1]} : vector<8x96xf32> to vector<8x32xf32>
    %142 = vector.extract_strided_slice %124 {offsets = [0, 64], sizes = [8, 32], strides = [1, 1]} : vector<8x96xf32> to vector<8x32xf32>
    %143 = arith.addf %142, %4 : vector<8x32xf32>
    %144 = arith.mulf %132, %143 : vector<8x32xf32>
    %145 = arith.addf %141, %144 : vector<8x32xf32>
    %146 = math.tanh %145 : vector<8x32xf32>
    %cst_53 = arith.constant 1.000000e+00 : f32
    %147 = vector.broadcast %cst_53 : f32 to vector<8x32xf32>
    %148 = arith.subf %147, %140 : vector<8x32xf32>
    %149 = arith.mulf %148, %146 : vector<8x32xf32>
    %150 = arith.mulf %140, %122 : vector<8x32xf32>
    %151 = arith.addf %149, %150 : vector<8x32xf32>
    %c3_i32 = arith.constant 3 : i32
    %152 = vector.broadcast %c3_i32 : i32 to vector<8x1xi32>
    %153 = arith.cmpi sgt, %0, %152 : vector<8x1xi32>
    %154 = vector.shape_cast %153 : vector<8x1xi1> to vector<8x1xi1>
    %155 = vector.broadcast %154 : vector<8x1xi1> to vector<8x32xi1>
    %156 = arith.select %155, %151, %122 : vector<8x32xi1>, vector<8x32xf32>
    %c0_54 = arith.constant 0 : index
    %c0_55 = arith.constant 0 : index
    %157 = vector.load %arg15[%c0_54, %c0_55] : memref<8x32xf32, #tpu.memory_space<vmem>>, vector<8x32xf32>
    tpu.vector_store %arg15[%c0_54, %c0_55], %156 {strides = array<i32>} : memref<8x32xf32, #tpu.memory_space<vmem>>, vector<8x32xf32>,
    %c0_56 = arith.constant 0 : index
    %c0_57 = arith.constant 0 : index
    %158 = vector.load %arg15[%c0_56, %c0_57] : memref<8x32xf32, #tpu.memory_space<vmem>>, vector<8x32xf32>
    %c32 = arith.constant 32 : index
    %c0_58 = arith.constant 0 : index
    %159 = vector.load %arg14[%c32, %c0_58] : memref<64x96xf32, #tpu.memory_space<vmem>>, vector<8x96xf32>
    %cst_59 = arith.constant dense<0.000000e+00> : vector<8x96xf32>
    %160 = tpu.matmul %158, %1, %cst_59 {dimension_numbers = #tpu.dot_dimension_numbers<[1], [0], [0], [1], [0, 0, 1, 1], [], []>} : vector<8x32xf32>, vector<32x96xf32>, vector<8x96xf32> -> vector<8x96xf32>
    %161 = vector.extract_strided_slice %159 {offsets = [0, 0], sizes = [8, 32], strides = [1, 1]} : vector<8x96xf32> to vector<8x32xf32>
    %162 = vector.extract_strided_slice %160 {offsets = [0, 0], sizes = [8, 32], strides = [1, 1]} : vector<8x96xf32> to vector<8x32xf32>
    %163 = arith.addf %161, %162 : vector<8x32xf32>
    %164 = arith.negf %163 : vector<8x32xf32>
    %165 = math.exp %164 : vector<8x32xf32>
    %cst_60 = arith.constant 1.000000e+00 : f32
    %166 = vector.broadcast %cst_60 : f32 to vector<8x32xf32>
    %167 = arith.addf %166, %165 : vector<8x32xf32>
    %168 = arith.divf %166, %167 : vector<8x32xf32>
    %169 = vector.extract_strided_slice %159 {offsets = [0, 32], sizes = [8, 32], strides = [1, 1]} : vector<8x96xf32> to vector<8x32xf32>
    %170 = vector.extract_strided_slice %160 {offsets = [0, 32], sizes = [8, 32], strides = [1, 1]} : vector<8x96xf32> to vector<8x32xf32>
    %171 = arith.addf %169, %170 : vector<8x32xf32>
    %172 = arith.negf %171 : vector<8x32xf32>
    %173 = math.exp %172 : vector<8x32xf32>
    %cst_61 = arith.constant 1.000000e+00 : f32
    %174 = vector.broadcast %cst_61 : f32 to vector<8x32xf32>
    %175 = arith.addf %174, %173 : vector<8x32xf32>
    %176 = arith.divf %174, %175 : vector<8x32xf32>
    %177 = vector.extract_strided_slice %159 {offsets = [0, 64], sizes = [8, 32], strides = [1, 1]} : vector<8x96xf32> to vector<8x32xf32>
    %178 = vector.extract_strided_slice %160 {offsets = [0, 64], sizes = [8, 32], strides = [1, 1]} : vector<8x96xf32> to vector<8x32xf32>
    %179 = arith.addf %178, %4 : vector<8x32xf32>
    %180 = arith.mulf %168, %179 : vector<8x32xf32>
    %181 = arith.addf %177, %180 : vector<8x32xf32>
    %182 = math.tanh %181 : vector<8x32xf32>
    %cst_62 = arith.constant 1.000000e+00 : f32
    %183 = vector.broadcast %cst_62 : f32 to vector<8x32xf32>
    %184 = arith.subf %183, %176 : vector<8x32xf32>
    %185 = arith.mulf %184, %182 : vector<8x32xf32>
    %186 = arith.mulf %176, %158 : vector<8x32xf32>
    %187 = arith.addf %185, %186 : vector<8x32xf32>
    %c4_i32 = arith.constant 4 : i32
    %188 = vector.broadcast %c4_i32 : i32 to vector<8x1xi32>
    %189 = arith.cmpi sgt, %0, %188 : vector<8x1xi32>
    %190 = vector.shape_cast %189 : vector<8x1xi1> to vector<8x1xi1>
    %191 = vector.broadcast %190 : vector<8x1xi1> to vector<8x32xi1>
    %192 = arith.select %191, %187, %158 : vector<8x32xi1>, vector<8x32xf32>
    %c0_63 = arith.constant 0 : index
    %c0_64 = arith.constant 0 : index
    %193 = vector.load %arg15[%c0_63, %c0_64] : memref<8x32xf32, #tpu.memory_space<vmem>>, vector<8x32xf32>
    tpu.vector_store %arg15[%c0_63, %c0_64], %192 {strides = array<i32>} : memref<8x32xf32, #tpu.memory_space<vmem>>, vector<8x32xf32>,
    %c0_65 = arith.constant 0 : index
    %c0_66 = arith.constant 0 : index
    %194 = vector.load %arg15[%c0_65, %c0_66] : memref<8x32xf32, #tpu.memory_space<vmem>>, vector<8x32xf32>
    %c40 = arith.constant 40 : index
    %c0_67 = arith.constant 0 : index
    %195 = vector.load %arg14[%c40, %c0_67] : memref<64x96xf32, #tpu.memory_space<vmem>>, vector<8x96xf32>
    %cst_68 = arith.constant dense<0.000000e+00> : vector<8x96xf32>
    %196 = tpu.matmul %194, %1, %cst_68 {dimension_numbers = #tpu.dot_dimension_numbers<[1], [0], [0], [1], [0, 0, 1, 1], [], []>} : vector<8x32xf32>, vector<32x96xf32>, vector<8x96xf32> -> vector<8x96xf32>
    %197 = vector.extract_strided_slice %195 {offsets = [0, 0], sizes = [8, 32], strides = [1, 1]} : vector<8x96xf32> to vector<8x32xf32>
    %198 = vector.extract_strided_slice %196 {offsets = [0, 0], sizes = [8, 32], strides = [1, 1]} : vector<8x96xf32> to vector<8x32xf32>
    %199 = arith.addf %197, %198 : vector<8x32xf32>
    %200 = arith.negf %199 : vector<8x32xf32>
    %201 = math.exp %200 : vector<8x32xf32>
    %cst_69 = arith.constant 1.000000e+00 : f32
    %202 = vector.broadcast %cst_69 : f32 to vector<8x32xf32>
    %203 = arith.addf %202, %201 : vector<8x32xf32>
    %204 = arith.divf %202, %203 : vector<8x32xf32>
    %205 = vector.extract_strided_slice %195 {offsets = [0, 32], sizes = [8, 32], strides = [1, 1]} : vector<8x96xf32> to vector<8x32xf32>
    %206 = vector.extract_strided_slice %196 {offsets = [0, 32], sizes = [8, 32], strides = [1, 1]} : vector<8x96xf32> to vector<8x32xf32>
    %207 = arith.addf %205, %206 : vector<8x32xf32>
    %208 = arith.negf %207 : vector<8x32xf32>
    %209 = math.exp %208 : vector<8x32xf32>
    %cst_70 = arith.constant 1.000000e+00 : f32
    %210 = vector.broadcast %cst_70 : f32 to vector<8x32xf32>
    %211 = arith.addf %210, %209 : vector<8x32xf32>
    %212 = arith.divf %210, %211 : vector<8x32xf32>
    %213 = vector.extract_strided_slice %195 {offsets = [0, 64], sizes = [8, 32], strides = [1, 1]} : vector<8x96xf32> to vector<8x32xf32>
    %214 = vector.extract_strided_slice %196 {offsets = [0, 64], sizes = [8, 32], strides = [1, 1]} : vector<8x96xf32> to vector<8x32xf32>
    %215 = arith.addf %214, %4 : vector<8x32xf32>
    %216 = arith.mulf %204, %215 : vector<8x32xf32>
    %217 = arith.addf %213, %216 : vector<8x32xf32>
    %218 = math.tanh %217 : vector<8x32xf32>
    %cst_71 = arith.constant 1.000000e+00 : f32
    %219 = vector.broadcast %cst_71 : f32 to vector<8x32xf32>
    %220 = arith.subf %219, %212 : vector<8x32xf32>
    %221 = arith.mulf %220, %218 : vector<8x32xf32>
    %222 = arith.mulf %212, %194 : vector<8x32xf32>
    %223 = arith.addf %221, %222 : vector<8x32xf32>
    %c5_i32 = arith.constant 5 : i32
    %224 = vector.broadcast %c5_i32 : i32 to vector<8x1xi32>
    %225 = arith.cmpi sgt, %0, %224 : vector<8x1xi32>
    %226 = vector.shape_cast %225 : vector<8x1xi1> to vector<8x1xi1>
    %227 = vector.broadcast %226 : vector<8x1xi1> to vector<8x32xi1>
    %228 = arith.select %227, %223, %194 : vector<8x32xi1>, vector<8x32xf32>
    %c0_72 = arith.constant 0 : index
    %c0_73 = arith.constant 0 : index
    %229 = vector.load %arg15[%c0_72, %c0_73] : memref<8x32xf32, #tpu.memory_space<vmem>>, vector<8x32xf32>
    tpu.vector_store %arg15[%c0_72, %c0_73], %228 {strides = array<i32>} : memref<8x32xf32, #tpu.memory_space<vmem>>, vector<8x32xf32>,
    %c0_74 = arith.constant 0 : index
    %c0_75 = arith.constant 0 : index
    %230 = vector.load %arg15[%c0_74, %c0_75] : memref<8x32xf32, #tpu.memory_space<vmem>>, vector<8x32xf32>
    %c48 = arith.constant 48 : index
    %c0_76 = arith.constant 0 : index
    %231 = vector.load %arg14[%c48, %c0_76] : memref<64x96xf32, #tpu.memory_space<vmem>>, vector<8x96xf32>
    %cst_77 = arith.constant dense<0.000000e+00> : vector<8x96xf32>
    %232 = tpu.matmul %230, %1, %cst_77 {dimension_numbers = #tpu.dot_dimension_numbers<[1], [0], [0], [1], [0, 0, 1, 1], [], []>} : vector<8x32xf32>, vector<32x96xf32>, vector<8x96xf32> -> vector<8x96xf32>
    %233 = vector.extract_strided_slice %231 {offsets = [0, 0], sizes = [8, 32], strides = [1, 1]} : vector<8x96xf32> to vector<8x32xf32>
    %234 = vector.extract_strided_slice %232 {offsets = [0, 0], sizes = [8, 32], strides = [1, 1]} : vector<8x96xf32> to vector<8x32xf32>
    %235 = arith.addf %233, %234 : vector<8x32xf32>
    %236 = arith.negf %235 : vector<8x32xf32>
    %237 = math.exp %236 : vector<8x32xf32>
    %cst_78 = arith.constant 1.000000e+00 : f32
    %238 = vector.broadcast %cst_78 : f32 to vector<8x32xf32>
    %239 = arith.addf %238, %237 : vector<8x32xf32>
    %240 = arith.divf %238, %239 : vector<8x32xf32>
    %241 = vector.extract_strided_slice %231 {offsets = [0, 32], sizes = [8, 32], strides = [1, 1]} : vector<8x96xf32> to vector<8x32xf32>
    %242 = vector.extract_strided_slice %232 {offsets = [0, 32], sizes = [8, 32], strides = [1, 1]} : vector<8x96xf32> to vector<8x32xf32>
    %243 = arith.addf %241, %242 : vector<8x32xf32>
    %244 = arith.negf %243 : vector<8x32xf32>
    %245 = math.exp %244 : vector<8x32xf32>
    %cst_79 = arith.constant 1.000000e+00 : f32
    %246 = vector.broadcast %cst_79 : f32 to vector<8x32xf32>
    %247 = arith.addf %246, %245 : vector<8x32xf32>
    %248 = arith.divf %246, %247 : vector<8x32xf32>
    %249 = vector.extract_strided_slice %231 {offsets = [0, 64], sizes = [8, 32], strides = [1, 1]} : vector<8x96xf32> to vector<8x32xf32>
    %250 = vector.extract_strided_slice %232 {offsets = [0, 64], sizes = [8, 32], strides = [1, 1]} : vector<8x96xf32> to vector<8x32xf32>
    %251 = arith.addf %250, %4 : vector<8x32xf32>
    %252 = arith.mulf %240, %251 : vector<8x32xf32>
    %253 = arith.addf %249, %252 : vector<8x32xf32>
    %254 = math.tanh %253 : vector<8x32xf32>
    %cst_80 = arith.constant 1.000000e+00 : f32
    %255 = vector.broadcast %cst_80 : f32 to vector<8x32xf32>
    %256 = arith.subf %255, %248 : vector<8x32xf32>
    %257 = arith.mulf %256, %254 : vector<8x32xf32>
    %258 = arith.mulf %248, %230 : vector<8x32xf32>
    %259 = arith.addf %257, %258 : vector<8x32xf32>
    %c6_i32 = arith.constant 6 : i32
    %260 = vector.broadcast %c6_i32 : i32 to vector<8x1xi32>
    %261 = arith.cmpi sgt, %0, %260 : vector<8x1xi32>
    %262 = vector.shape_cast %261 : vector<8x1xi1> to vector<8x1xi1>
    %263 = vector.broadcast %262 : vector<8x1xi1> to vector<8x32xi1>
    %264 = arith.select %263, %259, %230 : vector<8x32xi1>, vector<8x32xf32>
    %c0_81 = arith.constant 0 : index
    %c0_82 = arith.constant 0 : index
    %265 = vector.load %arg15[%c0_81, %c0_82] : memref<8x32xf32, #tpu.memory_space<vmem>>, vector<8x32xf32>
    tpu.vector_store %arg15[%c0_81, %c0_82], %264 {strides = array<i32>} : memref<8x32xf32, #tpu.memory_space<vmem>>, vector<8x32xf32>,
    %c0_83 = arith.constant 0 : index
    %c0_84 = arith.constant 0 : index
    %266 = vector.load %arg15[%c0_83, %c0_84] : memref<8x32xf32, #tpu.memory_space<vmem>>, vector<8x32xf32>
    %c56 = arith.constant 56 : index
    %c0_85 = arith.constant 0 : index
    %267 = vector.load %arg14[%c56, %c0_85] : memref<64x96xf32, #tpu.memory_space<vmem>>, vector<8x96xf32>
    %cst_86 = arith.constant dense<0.000000e+00> : vector<8x96xf32>
    %268 = tpu.matmul %266, %1, %cst_86 {dimension_numbers = #tpu.dot_dimension_numbers<[1], [0], [0], [1], [0, 0, 1, 1], [], []>} : vector<8x32xf32>, vector<32x96xf32>, vector<8x96xf32> -> vector<8x96xf32>
    %269 = vector.extract_strided_slice %267 {offsets = [0, 0], sizes = [8, 32], strides = [1, 1]} : vector<8x96xf32> to vector<8x32xf32>
    %270 = vector.extract_strided_slice %268 {offsets = [0, 0], sizes = [8, 32], strides = [1, 1]} : vector<8x96xf32> to vector<8x32xf32>
    %271 = arith.addf %269, %270 : vector<8x32xf32>
    %272 = arith.negf %271 : vector<8x32xf32>
    %273 = math.exp %272 : vector<8x32xf32>
    %cst_87 = arith.constant 1.000000e+00 : f32
    %274 = vector.broadcast %cst_87 : f32 to vector<8x32xf32>
    %275 = arith.addf %274, %273 : vector<8x32xf32>
    %276 = arith.divf %274, %275 : vector<8x32xf32>
    %277 = vector.extract_strided_slice %267 {offsets = [0, 32], sizes = [8, 32], strides = [1, 1]} : vector<8x96xf32> to vector<8x32xf32>
    %278 = vector.extract_strided_slice %268 {offsets = [0, 32], sizes = [8, 32], strides = [1, 1]} : vector<8x96xf32> to vector<8x32xf32>
    %279 = arith.addf %277, %278 : vector<8x32xf32>
    %280 = arith.negf %279 : vector<8x32xf32>
    %281 = math.exp %280 : vector<8x32xf32>
    %cst_88 = arith.constant 1.000000e+00 : f32
    %282 = vector.broadcast %cst_88 : f32 to vector<8x32xf32>
    %283 = arith.addf %282, %281 : vector<8x32xf32>
    %284 = arith.divf %282, %283 : vector<8x32xf32>
    %285 = vector.extract_strided_slice %267 {offsets = [0, 64], sizes = [8, 32], strides = [1, 1]} : vector<8x96xf32> to vector<8x32xf32>
    %286 = vector.extract_strided_slice %268 {offsets = [0, 64], sizes = [8, 32], strides = [1, 1]} : vector<8x96xf32> to vector<8x32xf32>
    %287 = arith.addf %286, %4 : vector<8x32xf32>
    %288 = arith.mulf %276, %287 : vector<8x32xf32>
    %289 = arith.addf %285, %288 : vector<8x32xf32>
    %290 = math.tanh %289 : vector<8x32xf32>
    %cst_89 = arith.constant 1.000000e+00 : f32
    %291 = vector.broadcast %cst_89 : f32 to vector<8x32xf32>
    %292 = arith.subf %291, %284 : vector<8x32xf32>
    %293 = arith.mulf %292, %290 : vector<8x32xf32>
    %294 = arith.mulf %284, %266 : vector<8x32xf32>
    %295 = arith.addf %293, %294 : vector<8x32xf32>
    %c7_i32 = arith.constant 7 : i32
    %296 = vector.broadcast %c7_i32 : i32 to vector<8x1xi32>
    %297 = arith.cmpi sgt, %0, %296 : vector<8x1xi32>
    %298 = vector.shape_cast %297 : vector<8x1xi1> to vector<8x1xi1>
    %299 = vector.broadcast %298 : vector<8x1xi1> to vector<8x32xi1>
    %300 = arith.select %299, %295, %266 : vector<8x32xi1>, vector<8x32xf32>
    %c0_90 = arith.constant 0 : index
    %c0_91 = arith.constant 0 : index
    %301 = vector.load %arg15[%c0_90, %c0_91] : memref<8x32xf32, #tpu.memory_space<vmem>>, vector<8x32xf32>
    tpu.vector_store %arg15[%c0_90, %c0_91], %300 {strides = array<i32>} : memref<8x32xf32, #tpu.memory_space<vmem>>, vector<8x32xf32>,
    %c0_92 = arith.constant 0 : index
    %c0_93 = arith.constant 0 : index
    %302 = vector.load %arg15[%c0_92, %c0_93] : memref<8x32xf32, #tpu.memory_space<vmem>>, vector<8x32xf32>
    %c0_94 = arith.constant 0 : index
    %c0_95 = arith.constant 0 : index
    %303 = vector.load %arg9[%c0_94, %c0_95] : memref<32x16xf32, #tpu.memory_space<vmem>>, vector<32x16xf32>
    %c0_96 = arith.constant 0 : index
    %c0_97 = arith.constant 0 : index
    %304 = vector.load %arg10[%c0_96, %c0_97] : memref<1x16xf32, #tpu.memory_space<vmem>>, vector<1x16xf32>
    %cst_98 = arith.constant dense<0.000000e+00> : vector<8x16xf32>
    %305 = tpu.matmul %302, %303, %cst_98 {dimension_numbers = #tpu.dot_dimension_numbers<[1], [0], [0], [1], [0, 0, 1, 1], [], []>} : vector<8x32xf32>, vector<32x16xf32>, vector<8x16xf32> -> vector<8x16xf32>
    %306 = vector.broadcast %304 : vector<1x16xf32> to vector<8x16xf32>
    %307 = arith.addf %305, %306 : vector<8x16xf32>
    %cst_99 = arith.constant 0.000000e+00 : f32
    %308 = vector.broadcast %cst_99 : f32 to vector<8x16xf32>
    %309 = arith.cmpf ogt, %307, %308 : vector<8x16xf32>
    %310 = math.exp %307 : vector<8x16xf32>
    %cst_100 = arith.constant 1.000000e+00 : f32
    %311 = vector.broadcast %cst_100 : f32 to vector<8x16xf32>
    %312 = arith.subf %310, %311 : vector<8x16xf32>
    %cst_101 = arith.constant 1.67326319 : f32
    %313 = vector.broadcast %cst_101 : f32 to vector<8x16xf32>
    %314 = arith.mulf %313, %312 : vector<8x16xf32>
    %315 = arith.select %309, %307, %314 : vector<8x16xi1>, vector<8x16xf32>
    %cst_102 = arith.constant 1.05070102 : f32
    %316 = vector.broadcast %cst_102 : f32 to vector<8x16xf32>
    %317 = arith.mulf %316, %315 : vector<8x16xf32>
    %c0_103 = arith.constant 0 : index
    %c0_104 = arith.constant 0 : index
    %318 = vector.load %arg11[%c0_103, %c0_104] : memref<16x1xf32, #tpu.memory_space<vmem>>, vector<16x1xf32>
    %c0_105 = arith.constant 0 : index
    %c0_106 = arith.constant 0 : index
    %319 = vector.load %arg12[%c0_105, %c0_106] : memref<1x1xf32, #tpu.memory_space<vmem>>, vector<1x1xf32>
    %cst_107 = arith.constant dense<0.000000e+00> : vector<8x1xf32>
    %320 = tpu.matmul %317, %318, %cst_107 {dimension_numbers = #tpu.dot_dimension_numbers<[1], [0], [0], [1], [0, 0, 1, 1], [], []>} : vector<8x16xf32>, vector<16x1xf32>, vector<8x1xf32> -> vector<8x1xf32>
    %321 = vector.broadcast %319 : vector<1x1xf32> to vector<8x1xf32>
    %322 = arith.addf %320, %321 : vector<8x1xf32>
    %cst_108 = arith.constant 0.000000e+00 : f32
    %323 = vector.broadcast %cst_108 : f32 to vector<8x1xf32>
    %324 = arith.cmpf ogt, %322, %323 : vector<8x1xf32>
    %325 = math.exp %322 : vector<8x1xf32>
    %cst_109 = arith.constant 1.000000e+00 : f32
    %326 = vector.broadcast %cst_109 : f32 to vector<8x1xf32>
    %327 = arith.subf %325, %326 : vector<8x1xf32>
    %cst_110 = arith.constant 1.67326319 : f32
    %328 = vector.broadcast %cst_110 : f32 to vector<8x1xf32>
    %329 = arith.mulf %328, %327 : vector<8x1xf32>
    %330 = arith.select %324, %322, %329 : vector<8x1xi1>, vector<8x1xf32>
    %cst_111 = arith.constant 1.05070102 : f32
    %331 = vector.broadcast %cst_111 : f32 to vector<8x1xf32>
    %332 = arith.mulf %331, %330 : vector<8x1xf32>
    %333 = arith.negf %332 : vector<8x1xf32>
    %334 = math.exp %333 : vector<8x1xf32>
    %cst_112 = arith.constant 1.000000e+00 : f32
    %335 = vector.broadcast %cst_112 : f32 to vector<8x1xf32>
    %336 = arith.addf %335, %334 : vector<8x1xf32>
    %337 = arith.divf %335, %336 : vector<8x1xf32>
    %338 = tpu.transpose %337, [1, 0] : vector<8x1xf32> -> vector<1x8xf32>
    %c0_113 = arith.constant 0 : index
    %c0_114 = arith.constant 0 : index
    %339 = vector.load %arg13[%c0_113, %c0_114] : memref<1x8xf32, #tpu.memory_space<vmem>>, vector<1x8xf32>
    tpu.vector_store %arg13[%c0_113, %c0_114], %338 {strides = array<i32>} : memref<1x8xf32, #tpu.memory_space<vmem>>, vector<1x8xf32>,
    return
  }
  func.func @transform_0(%arg0: i32, %arg1: memref<1xi32, #tpu.memory_space<smem>>) -> (i32, i32, i32) {
    %c0_i32 = arith.constant 0 : i32
    %c0_i32_0 = arith.constant 0 : i32
    %c0_i32_1 = arith.constant 0 : i32
    return %arg0, %c0_i32, %c0_i32_0 : i32, i32, i32
  }
  func.func @transform_1(%arg0: i32, %arg1: memref<1xi32, #tpu.memory_space<smem>>) -> (i32, i32) {
    %c0_i32 = arith.constant 0 : i32
    %c0_i32_0 = arith.constant 0 : i32
    return %arg0, %c0_i32 : i32, i32
  }
  func.func @transform_2(%arg0: i32, %arg1: memref<1xi32, #tpu.memory_space<smem>>) -> (i32, i32) {
    %c0_i32 = arith.constant 0 : i32
    %c0_i32_0 = arith.constant 0 : i32
    return %arg0, %c0_i32 : i32, i32
  }
  func.func @transform_3(%arg0: i32, %arg1: memref<1xi32, #tpu.memory_space<smem>>) -> (i32, i32) {
    %c0_i32 = arith.constant 0 : i32
    %c0_i32_0 = arith.constant 0 : i32
    %c0_i32_1 = arith.constant 0 : i32
    return %c0_i32, %c0_i32_0 : i32, i32
  }
  func.func @transform_4(%arg0: i32, %arg1: memref<1xi32, #tpu.memory_space<smem>>) -> (i32, i32) {
    %c0_i32 = arith.constant 0 : i32
    %c0_i32_0 = arith.constant 0 : i32
    %c0_i32_1 = arith.constant 0 : i32
    return %c0_i32, %c0_i32_0 : i32, i32
  }
  func.func @transform_5(%arg0: i32, %arg1: memref<1xi32, #tpu.memory_space<smem>>) -> (i32, i32) {
    %c0_i32 = arith.constant 0 : i32
    %c0_i32_0 = arith.constant 0 : i32
    %c0_i32_1 = arith.constant 0 : i32
    return %c0_i32, %c0_i32_0 : i32, i32
  }
  func.func @transform_6(%arg0: i32, %arg1: memref<1xi32, #tpu.memory_space<smem>>) -> (i32, i32) {
    %c0_i32 = arith.constant 0 : i32
    %c0_i32_0 = arith.constant 0 : i32
    %c0_i32_1 = arith.constant 0 : i32
    return %c0_i32, %c0_i32_0 : i32, i32
  }
  func.func @transform_7(%arg0: i32, %arg1: memref<1xi32, #tpu.memory_space<smem>>) -> (i32, i32) {
    %c0_i32 = arith.constant 0 : i32
    %c0_i32_0 = arith.constant 0 : i32
    %c0_i32_1 = arith.constant 0 : i32
    return %c0_i32, %c0_i32_0 : i32, i32
  }
  func.func @transform_8(%arg0: i32, %arg1: memref<1xi32, #tpu.memory_space<smem>>) -> (i32, i32) {
    %c0_i32 = arith.constant 0 : i32
    %c0_i32_0 = arith.constant 0 : i32
    %c0_i32_1 = arith.constant 0 : i32
    return %c0_i32, %c0_i32_0 : i32, i32
  }
  func.func @transform_9(%arg0: i32, %arg1: memref<1xi32, #tpu.memory_space<smem>>) -> (i32, i32) {
    %c0_i32 = arith.constant 0 : i32
    %c0_i32_0 = arith.constant 0 : i32
    %c0_i32_1 = arith.constant 0 : i32
    return %c0_i32, %c0_i32_0 : i32, i32
  }
  func.func @transform_10(%arg0: i32, %arg1: memref<1xi32, #tpu.memory_space<smem>>) -> (i32, i32) {
    %c0_i32 = arith.constant 0 : i32
    %c0_i32_0 = arith.constant 0 : i32
    %c0_i32_1 = arith.constant 0 : i32
    return %c0_i32, %c0_i32_0 : i32, i32
  }
  func.func @transform_11(%arg0: i32, %arg1: memref<1xi32, #tpu.memory_space<smem>>) -> (i32, i32) {
    %c0_i32 = arith.constant 0 : i32
    %c0_i32_0 = arith.constant 0 : i32
    return %c0_i32, %arg0 : i32, i32
  }
}

</mosaic_0001>

<bundles_post_ra>
// kernel: tpu_custom_call.1
= control target key start
LH: loop header
LB: loop body
LE: loop exit
PB: predicated region body
PF: predicated region fallthrough
CT: control target
= control target key end

     0   :  { %s2125_s0 = inlined_call_operand.<no memory space> [shape: s32[1], index: 0, kind: input, shape index: {}]   ;;  %s2126_s1 = inlined_call_operand.vmem [shape: f32[1,64,5], index: 1, kind: input, shape index: {}]   ;;  %s2127_s2 = inlined_call_operand.vmem [shape: s32[8,1], index: 2, kind: input, shape index: {}]   ;;  %s2128_s3 = inlined_call_operand.vmem [shape: f32[8,4], index: 3, kind: input, shape index: {}]   ;;  %s2129_s4 = inlined_call_operand.vmem [shape: f32[4,32], index: 4, kind: input, shape index: {}]   ;;  %s2130_s5 = inlined_call_operand.vmem [shape: f32[5,96], index: 5, kind: input, shape index: {}]   ;;  %s2131_s6 = inlined_call_operand.vmem [shape: f32[32,96], index: 6, kind: input, shape index: {}]   ;;  %s2132_s7 = inlined_call_operand.vmem [shape: f32[1,32], index: 7, kind: input, shape index: {}]   ;;  %s2133_s8 = inlined_call_operand.vmem [shape: f32[32,16], index: 8, kind: input, shape index: {}]   ;;  %s2134_s9 = inlined_call_operand.vmem [shape: f32[1,16], index: 9, kind: input, shape index: {}]   ;;  %s2135_s10 = inlined_call_operand.vmem [shape: f32[16,1], index: 10, kind: input, shape index: {}]   ;;  %s2136_s11 = inlined_call_operand.<no memory space> [shape: f32[1,1], index: 11, kind: input, shape index: {}]   ;;  %s2137_s12 = inlined_call_operand.hbm [shape: f32[1,8], index: 12, kind: output, shape index: {}]  }
   0x1   :  { %v18_v0 = vstv %s2136_s11 }
   0x2   :  { %19 = vst [vmem:[#allocation6] sm:$0x1] %v18_v0 }
   0x3   :  { %v55_v1 = vld [vmem:[%s2129_s4] sm:$0xf]  ;;  %vm60_vm0 = vcmask 1043456   ;;  %v1769_v3 = vmov 0.0   ;;  %vm1770_vm1 = vmmov 0   ;;  %vm56_vm2 = vcmask 31744  }
   0x4   :  { %v54_v2 = vld [vmem:[%s2128_s3] sm:$0xff]  ;;  %1557 = vmatprep.subr.mxu0 %v1769_v3  ;;  %1559 = vmatprep.mubr.msk.f32.mxu0 %vm1770_vm1, %v1769_v3  ;;  %vm170_vm3 = vcmask 1044480   ;;  %vm145_vm4 = vcmask 39936   ;;  %v137_v6 = vld [vmem:[%s2126_s1 + $0x8] sm:$0xff] }
   0x5   :  { %v144_v4 = vld [vmem:[%s2130_s5] sm:$0x1f]  ;;  %1558 = vmatpush3.msk.msra.mxu0 %vm60_vm0, %v55_v1 }
   0x6   :  { %v136_v5 = vld [vmem:[%s2126_s1] sm:$0xff]  ;;  %1562 = vmatprep.subr.msk.mxu1 %vm170_vm3, %v144_v4 }
   0x7   :  { %20 = vsyncpa [#allocation8], 0  ;;  %1560 = vmatmul.mubr.msk.f32.vlgmr.msra.gmra.mxu0 %vm56_vm2, %v54_v2  ;;  %1563 = vmatpush3.msk.msra.mxu1 %vm170_vm3, %v144_v4  ;;  %v1871_v7 = vld [vmem:[%s2131_s6 + $0x18] sm:$0xff]  ;;  %v1877_v8 = vld [vmem:[%s2131_s6 + $0x10] sm:$0xff]  ;;  %vm134_vm5 = vcmask 261120   ;;  %vm279_vm6 = vcmask 785408  }
   0x8   :  { %1564 = vmatprep.mubr.msk.f32.mxu1 %vm145_vm4, %v136_v5  ;;  %1576 = vmatprep.subr.mxu0 %v1769_v3  ;;  %v1884_v9 = vld [vmem:[%s2131_s6 + $0x8] sm:$0xff]  ;;  %v1893_v10 = vld [vmem:[%s2131_s6] sm:$0xff]  ;;  %s1771_s6 = smov 64   ;;  %v1772_v17 = vmov 0   ;;  %s1773_s20 = smov 32   ;;  %v138_v59 = vld [vmem:[%s2126_s1 + $0x10] sm:$0xff] }
   0x9   :  { %1565 = vmatmul.mubr.msk.f32.vlgmr.msra.gmra.mxu1 %vm145_vm4, %v137_v6  ;;  %1584 = vmatprep.mubr.msk.f32.mxu0 %vm1770_vm1, %v1769_v3  ;;  %v1463_v11 = vld [vmem:[%s2132_s7] ss:$0 sm:$0xff]  ;;  %s1774_s21 = smov 96   ;;  %v139_v60 = vld [vmem:[%s2126_s1 + $0x18] sm:$0xff]  ;;  %v141_v62 = vld [vmem:[%s2126_s1 + $0x28] sm:$0xff] }
   0xa   :  { %1598 = vmatprep.subr.mxu1 %v1769_v3  ;;  %1577 = vmatpush3.msra.mxu0 %v1871_v7  ;;  %v1931_v27 = vld [vmem:[%s2127_s2] sm:$0xff]  ;;  %v142_v1 = vld [vmem:[%s2126_s1 + $0x30] sm:$0xff]  ;;  %v143_v2 = vld [vmem:[%s2126_s1 + $0x38] sm:$0xff] }
   0xb   :  { %1599 = vmatpush3.msra.mxu1 %v1871_v7  ;;  %1578 = vmatprep.subr.mxu0 %v1769_v3  ;;  %vm396_vm7 = vcmp.gt.s32.totalorder %v1931_v27, 0  ;;  %vm513_vm9 = vcmp.gt.s32.totalorder %v1931_v27, 1  ;;  %v140_v61 = vld [vmem:[%s2126_s1 + $0x20] sm:$0xff]  ;;  %vm630_vm11 = vcmp.gt.s32.totalorder %v1931_v27, 2  ;;  %vm747_vm13 = vcmp.gt.s32.totalorder %v1931_v27, 3 }
   0xc   :  { %1600 = vmatprep.subr.mxu1 %v1769_v3  ;;  %1579 = vmatpush3.msra.mxu0 %v1877_v8  ;;  %v397_v31 = vsel %vm396_vm7, 1, %v1772_v17  ;;  %v514_v48 = vsel %vm513_vm9, 1, %v1772_v17  ;;  %vm864_vm15 = vcmp.gt.s32.totalorder %v1931_v27, 4  ;;  %vm981_vm2 = vcmp.gt.s32.totalorder %v1931_v27, 5 }
   0xd   :  { %1601 = vmatpush3.msra.mxu1 %v1877_v8  ;;  %1580 = vmatprep.subr.mxu0 %v1769_v3  ;;  %vm1215_vm7 = vcmp.gt.s32.totalorder %v1931_v27, 7 }
   0xe   :  { %1602 = vmatprep.subr.mxu1 %v1769_v3  ;;  %1581 = vmatpush3.msra.mxu0 %v1884_v9 }
   0xf   :  { %1603 = vmatpush3.msra.mxu1 %v1884_v9  ;;  %1582 = vmatprep.subr.mxu0 %v1769_v3 }
  0x10   :  { %1604 = vmatprep.subr.mxu1 %v1769_v3  ;;  %1583 = vmatpush3.msra.mxu0 %v1893_v10 }
  0x11   :  { %1605 = vmatpush3.msra.mxu1 %v1893_v10  ;;  %1587 = vmatprep.subr.mxu0 %v1769_v3 }
  0x12   :  { %1620 = vmatprep.subr.mxu1 %v1769_v3  ;;  %370 = vrot.lane.b32.xlu0 %v1463_v11, %s1771_s6 }
  0x13   :  { %1689 = vset.pattern.permute.xlu1 %v1772_v17  ;;  %1690 = vset.pattern.permute.xlu0 %v1772_v17 }
  0x14   :  { %1567 = vmatprep.mubr.msk.f32.mxu1 %vm145_vm4, %v138_v59 }
  0x15   :  { %1568 = vmatmul.mubr.msk.f32.gmra.mxu1 %vm145_vm4, %v139_v60 }
  0x16   :  { %1570 = vmatprep.mubr.msk.f32.mxu1 %vm145_vm4, %v140_v61 }
  0x19   :  { %1571 = vmatmul.mubr.msk.f32.gmra.mxu1 %vm145_vm4, %v141_v62 }
  0x1a   :  { %1573 = vmatprep.mubr.msk.f32.mxu1 %vm145_vm4, %v142_v1 }
  0x1d   :  { %1574 = vmatmul.mubr.msk.f32.gmra.mxu1 %vm145_vm4, %v143_v2  ;;  %vm1098_vm4 = vcmp.gt.s32.totalorder %v1931_v27, 6 }
  0x1e   :  { %1606 = vmatprep.mubr.msk.f32.mxu1 %vm1770_vm1, %v1769_v3 }
  0x84   :  { %v1924_v18 = vpop.permute.xlu0 %370 }
  0xc7   :  { %v130_v12 = vpop.f32.mrf.mxu0 }
  0xc8   :  { %135 = vst.msk [vmem:[#allocation3] sm:$0xff] %vm134_vm5, %v130_v12 }
  0xc9   :  { %v1561_v13 = vpop.f32.mrf.mxu0  ;;  %v1566_v14 = vpop.f32.mrf.mxu1 }
  0xca   :  { %281 = vst.msk [vmem:[#allocation2 + $0x8] sm:$0xff] %vm279_vm6, %v1566_v14 }
  0xcb   :  { %v240_v15 = vpop.f32.mrf.mxu1 }
  0xcc   :  { %280 = vst.msk [vmem:[#allocation2] sm:$0xff] %vm279_vm6, %v240_v15 }
  0xcf   :  { %v288_v16 = vld [vmem:[#allocation3] sm:$0xff] }
  0xd0   :  { %1585 = vmatmul.mubr.msk.f32.vlgmr.msra.gmra.mxu0 %vm134_vm5, %v288_v16 }
  0xd1   :  { %1588 = vmatpush3.msra.mxu0 %v1871_v7  ;;  %1595 = vmatprep.mubr.msk.f32.mxu0 %vm1770_vm1, %v1769_v3  ;;  %v409_v49 = vld [vmem:[#allocation2 + $0x8] sm:$0xff] }
  0xd2   :  { %1589 = vmatprep.subr.mxu0 %v1769_v3 }
  0xd3   :  { %1590 = vmatpush3.msra.mxu0 %v1877_v8  ;;  %v289_v22 = vld [vmem:[#allocation2] sm:$0xff] }
  0xd4   :  { %1591 = vmatprep.subr.mxu0 %v1769_v3 }
  0xd5   :  { %1592 = vmatpush3.msra.mxu0 %v1884_v9  ;;  %v1569_v15 = vpop.f32.mrf.mxu1 }
  0xd6   :  { %1593 = vmatprep.subr.mxu0 %v1769_v3  ;;  %283 = vst.msk [vmem:[#allocation2 + $0x18] sm:$0xff] %vm279_vm6, %v1569_v15 }
  0xd7   :  { %1594 = vmatpush3.msra.mxu0 %v1893_v10 }
  0xd8   :  { %1609 = vmatprep.subr.mxu0 %v1769_v3 }
 0x190   :  { %v359_v19 = vpop.f32.mrf.mxu0 }
 0x191   :  { %v373_v20 = vadd.f32 %v1924_v18, %v359_v19  ;;  %v363_v23 = vadd.f32 %v359_v19, %v289_v22 }
 0x192   :  { %v1586_v21 = vpop.f32.mrf.mxu0 }
 0x193   :  { %375 = vrot.lane.b32.xlu0 %v373_v20, %s1771_s6  ;;  %v1476_v24 = vmul.f32 -1.442695, %v363_v23 }
 0x195   :  { %1691 = vpow2.f32 %v1476_v24 }
 0x1a2   :  { %v1692_v25 = vpop.eup %1691 }
 0x1a3   :  { %v367_v26 = vadd.f32 1.0, %v1692_v25 }
 0x1a5   :  { %1693 = vrcp.f32 %v367_v26 }
 0x1b2   :  { %v1694_v28 = vpop.eup %1693 }
 0x1b3   :  { %v385_v37 = vsub.f32 1.0, %v1694_v28 }
 0x205   :  { %v376_v29 = vpop.permute.xlu0 %375 }
 0x206   :  { %v378_v30 = vmul.f32 %v1694_v28, %v376_v29  ;;  %v631_v29 = vsel %vm630_vm11, 1, %v1772_v17 }
 0x208   :  { %380 = vrot.lane.b32.xlu1 %v378_v30, %s1771_s6 }
 0x20c   :  { %399 = vperm.xlu1 %1689, %v397_v31  }
 0x210   :  { %391 = vrot.lane.b32.xlu1 %v288_v16, %s1773_s20  ;;  %v250_v16 = vpop.f32.mrf.mxu1 }
 0x211   :  { %282 = vst.msk [vmem:[#allocation2 + $0x10] sm:$0xff] %vm279_vm6, %v250_v16 }
 0x212   :  { %v1572_v19 = vpop.f32.mrf.mxu1 }
 0x213   :  { %285 = vst.msk [vmem:[#allocation2 + $0x28] sm:$0xff] %vm279_vm6, %v1572_v19 }
 0x214   :  { %v260_v20 = vpop.f32.mrf.mxu1 }
 0x215   :  { %284 = vst.msk [vmem:[#allocation2 + $0x20] sm:$0xff] %vm279_vm6, %v260_v20 }
 0x216   :  { %v1575_v23 = vpop.f32.mrf.mxu1 }
 0x217   :  { %287 = vst.msk [vmem:[#allocation2 + $0x38] sm:$0xff] %vm279_vm6, %v1575_v23 }
 0x218   :  { %v270_v24 = vpop.f32.mrf.mxu1  ;;  %v526_v30 = vld [vmem:[#allocation2 + $0x10] sm:$0xff] }
 0x219   :  { %286 = vst.msk [vmem:[#allocation2 + $0x30] sm:$0xff] %vm279_vm6, %v270_v24 }
 0x21c   :  { %v760_v23 = vld [vmem:[#allocation2 + $0x20] sm:$0xff] }
 0x27a   :  { %v381_v32 = vpop.permute.xlu1 %380 }
 0x27b   :  { %v383_v33 = vadd.f32 %v381_v32, %v289_v22 }
 0x27d   :  { %1695 = vtanh.f32 %v383_v33 }
 0x287   :  { %v400_v35 = vpop.permute.xlu1 %399 }
 0x288   :  { %vm401_vm8 = vcmp.eq.s32.totalorder %v400_v35, 1 }
 0x28a   :  { %v1696_v34 = vpop.eup %1695 }
 0x28b   :  { %387 = vrot.lane.b32.xlu0 %v1696_v34, %s1774_s21  ;;  %v392_v36 = vpop.permute.xlu1 %391 }
 0x28c   :  { %v394_v39 = vmul.f32 %v1694_v28, %v392_v36 }
 0x2fd   :  { %v388_v38 = vpop.permute.xlu0 %387 }
 0x2fe   :  { %v390_v40 = vmul.f32 %v388_v38, %v385_v37 }
 0x300   :  { %v395_v41 = vadd.f32 %v394_v39, %v390_v40 }
 0x302   :  { %v402_v42 = vsel %vm401_vm8, %v395_v41, %v392_v36  ;;  %vm1328_vm8 = vcmask 130048  }
 0x303   :  { %404 = vrot.lane.b32.xlu0 %v402_v42, %s1774_s21 }
 0x375   :  { %v405_v43 = vpop.permute.xlu0 %404 }
 0x376   :  { %407 = vst.msk [vmem:[#allocation3] sm:$0xff] %vm134_vm5, %v405_v43 }
 0x37d   :  { %v408_v44 = vld [vmem:[#allocation3] sm:$0xff] }
 0x37e   :  { %1596 = vmatmul.mubr.msk.f32.vlgmr.msra.gmra.mxu0 %vm134_vm5, %v408_v44 }
 0x37f   :  { %1610 = vmatpush3.msra.mxu0 %v1871_v7  ;;  %1617 = vmatprep.mubr.msk.f32.mxu0 %vm1770_vm1, %v1769_v3 }
 0x380   :  { %1611 = vmatprep.subr.mxu0 %v1769_v3 }
 0x381   :  { %1612 = vmatpush3.msra.mxu0 %v1877_v8 }
 0x382   :  { %1613 = vmatprep.subr.mxu0 %v1769_v3 }
 0x383   :  { %1614 = vmatpush3.msra.mxu0 %v1884_v9 }
 0x384   :  { %1615 = vmatprep.subr.mxu0 %v1769_v3 }
 0x385   :  { %1616 = vmatpush3.msra.mxu0 %v1893_v10 }
 0x386   :  { %1631 = vmatprep.subr.mxu0 %v1769_v3 }
 0x43e   :  { %v479_v45 = vpop.f32.mrf.mxu0 }
 0x43f   :  { %v490_v46 = vadd.f32 %v479_v45, %v1924_v18  ;;  %v483_v50 = vadd.f32 %v479_v45, %v409_v49 }
 0x440   :  { %v1597_v47 = vpop.f32.mrf.mxu0 }
 0x441   :  { %492 = vrot.lane.b32.xlu1 %v490_v46, %s1771_s6  ;;  %v1478_v51 = vmul.f32 -1.442695, %v483_v50 }
 0x443   :  { %1697 = vpow2.f32 %v1478_v51 }
 0x445   :  { %516 = vperm.xlu1 %1689, %v514_v48  }
 0x449   :  { %508 = vrot.lane.b32.xlu1 %v408_v44, %s1773_s20 }
 0x450   :  { %v1698_v52 = vpop.eup %1697 }
 0x451   :  { %v487_v53 = vadd.f32 1.0, %v1698_v52 }
 0x453   :  { %1699 = vrcp.f32 %v487_v53 }
 0x460   :  { %v1700_v54 = vpop.eup %1699 }
 0x461   :  { %v502_v5 = vsub.f32 1.0, %v1700_v54 }
 0x4b3   :  { %v493_v55 = vpop.permute.xlu1 %492 }
 0x4b4   :  { %v495_v56 = vmul.f32 %v1700_v54, %v493_v55  ;;  %v643_v55 = vld [vmem:[#allocation2 + $0x18] sm:$0xff] }
 0x4b6   :  { %497 = vrot.lane.b32.xlu0 %v495_v56, %s1771_s6 }
 0x4c0   :  { %v517_v0 = vpop.permute.xlu1 %516 }
 0x4c1   :  { %vm518_vm10 = vcmp.eq.s32.totalorder %v517_v0, 1 }
 0x4c4   :  { %v509_v4 = vpop.permute.xlu1 %508 }
 0x4c5   :  { %v511_v11 = vmul.f32 %v1700_v54, %v509_v4  ;;  %v748_v54 = vsel %vm747_vm13, 1, %v1772_v17 }
 0x528   :  { %v498_v57 = vpop.permute.xlu0 %497 }
 0x529   :  { %v500_v58 = vadd.f32 %v498_v57, %v409_v49 }
 0x52b   :  { %1701 = vtanh.f32 %v500_v58 }
 0x538   :  { %v1702_v63 = vpop.eup %1701 }
 0x539   :  { %504 = vrot.lane.b32.xlu0 %v1702_v63, %s1774_s21 }
 0x5ab   :  { %v505_v6 = vpop.permute.xlu0 %504 }
 0x5ac   :  { %v507_v12 = vmul.f32 %v505_v6, %v502_v5 }
 0x5ae   :  { %v512_v13 = vadd.f32 %v511_v11, %v507_v12 }
 0x5b0   :  { %v519_v14 = vsel %vm518_vm10, %v512_v13, %v509_v4  ;;  %vm1447_vm10 = vcmask 57344  }
 0x5b1   :  { %521 = vrot.lane.b32.xlu0 %v519_v14, %s1774_s21 }
 0x623   :  { %v522_v21 = vpop.permute.xlu0 %521 }
 0x624   :  { %524 = vst.msk [vmem:[#allocation3] sm:$0xff] %vm134_vm5, %v522_v21 }
 0x62b   :  { %v525_v22 = vld [vmem:[#allocation3] sm:$0xff] }
 0x62c   :  { %1607 = vmatmul.mubr.msk.f32.vlgmr.msra.gmra.mxu1 %vm134_vm5, %v525_v22 }
 0x62d   :  { %1621 = vmatpush3.msra.mxu1 %v1871_v7  ;;  %1628 = vmatprep.mubr.msk.f32.mxu1 %vm1770_vm1, %v1769_v3 }
 0x62e   :  { %1622 = vmatprep.subr.mxu1 %v1769_v3 }
 0x62f   :  { %1623 = vmatpush3.msra.mxu1 %v1877_v8 }
 0x630   :  { %1624 = vmatprep.subr.mxu1 %v1769_v3 }
 0x631   :  { %1625 = vmatpush3.msra.mxu1 %v1884_v9 }
 0x632   :  { %1626 = vmatprep.subr.mxu1 %v1769_v3 }
 0x633   :  { %1627 = vmatpush3.msra.mxu1 %v1893_v10 }
 0x634   :  { %1642 = vmatprep.subr.mxu1 %v1769_v3 }
 0x6ec   :  { %v596_v25 = vpop.f32.mrf.mxu1 }
 0x6ed   :  { %v607_v26 = vadd.f32 %v596_v25, %v1924_v18  ;;  %v600_v31 = vadd.f32 %v596_v25, %v526_v30 }
 0x6ee   :  { %v1608_v28 = vpop.f32.mrf.mxu1 }
 0x6ef   :  { %609 = vrot.lane.b32.xlu1 %v607_v26, %s1771_s6  ;;  %v1480_v32 = vmul.f32 -1.442695, %v600_v31 }
 0x6f1   :  { %1703 = vpow2.f32 %v1480_v32 }
 0x6f3   :  { %633 = vperm.xlu1 %1689, %v631_v29  }
 0x6f7   :  { %625 = vrot.lane.b32.xlu1 %v525_v22, %s1773_s20  ;;  %v865_v22 = vsel %vm864_vm15, 1, %v1772_v17 }
 0x6fe   :  { %v1704_v33 = vpop.eup %1703 }
 0x6ff   :  { %v604_v34 = vadd.f32 1.0, %v1704_v33 }
 0x701   :  { %1705 = vrcp.f32 %v604_v34 }
 0x70e   :  { %v1706_v35 = vpop.eup %1705 }
 0x70f   :  { %v619_v43 = vsub.f32 1.0, %v1706_v35 }
 0x761   :  { %v610_v36 = vpop.permute.xlu1 %609 }
 0x762   :  { %v612_v37 = vmul.f32 %v1706_v35, %v610_v36 }
 0x764   :  { %614 = vrot.lane.b32.xlu0 %v612_v37, %s1771_s6 }
 0x76e   :  { %v634_v41 = vpop.permute.xlu1 %633 }
 0x76f   :  { %vm635_vm12 = vcmp.eq.s32.totalorder %v634_v41, 1 }
 0x772   :  { %v626_v42 = vpop.permute.xlu1 %625 }
 0x773   :  { %v628_v45 = vmul.f32 %v1706_v35, %v626_v42 }
 0x7d6   :  { %v615_v38 = vpop.permute.xlu0 %614 }
 0x7d7   :  { %v617_v39 = vadd.f32 %v615_v38, %v526_v30 }
 0x7d9   :  { %1707 = vtanh.f32 %v617_v39 }
 0x7e6   :  { %v1708_v40 = vpop.eup %1707 }
 0x7e7   :  { %621 = vrot.lane.b32.xlu0 %v1708_v40, %s1774_s21 }
 0x859   :  { %v622_v44 = vpop.permute.xlu0 %621 }
 0x85a   :  { %v624_v46 = vmul.f32 %v622_v44, %v619_v43 }
 0x85c   :  { %v629_v47 = vadd.f32 %v628_v45, %v624_v46 }
 0x85e   :  { %v636_v48 = vsel %vm635_vm12, %v629_v47, %v626_v42 }
 0x85f   :  { %638 = vrot.lane.b32.xlu0 %v636_v48, %s1774_s21 }
 0x8d1   :  { %v639_v49 = vpop.permute.xlu0 %638 }
 0x8d2   :  { %641 = vst.msk [vmem:[#allocation3] sm:$0xff] %vm134_vm5, %v639_v49 }
 0x8d9   :  { %v642_v50 = vld [vmem:[#allocation3] sm:$0xff] }
 0x8da   :  { %1618 = vmatmul.mubr.msk.f32.vlgmr.msra.gmra.mxu0 %vm134_vm5, %v642_v50 }
 0x8db   :  { %1632 = vmatpush3.msra.mxu0 %v1871_v7  ;;  %1639 = vmatprep.mubr.msk.f32.mxu0 %vm1770_vm1, %v1769_v3 }
 0x8dc   :  { %1633 = vmatprep.subr.mxu0 %v1769_v3 }
 0x8dd   :  { %1634 = vmatpush3.msra.mxu0 %v1877_v8 }
 0x8de   :  { %1635 = vmatprep.subr.mxu0 %v1769_v3 }
 0x8df   :  { %1636 = vmatpush3.msra.mxu0 %v1884_v9 }
 0x8e0   :  { %1637 = vmatprep.subr.mxu0 %v1769_v3 }
 0x8e1   :  { %1638 = vmatpush3.msra.mxu0 %v1893_v10 }
 0x8e2   :  { %1653 = vmatprep.subr.mxu0 %v1769_v3 }
 0x99a   :  { %v713_v51 = vpop.f32.mrf.mxu0 }
 0x99b   :  { %v724_v52 = vadd.f32 %v713_v51, %v1924_v18  ;;  %v717_v56 = vadd.f32 %v713_v51, %v643_v55 }
 0x99c   :  { %v1619_v53 = vpop.f32.mrf.mxu0 }
 0x99d   :  { %726 = vrot.lane.b32.xlu1 %v724_v52, %s1771_s6  ;;  %v1482_v57 = vmul.f32 -1.442695, %v717_v56 }
 0x99f   :  { %1709 = vpow2.f32 %v1482_v57 }
 0x9a1   :  { %750 = vperm.xlu1 %1689, %v748_v54  }
 0x9a5   :  { %742 = vrot.lane.b32.xlu1 %v642_v50, %s1773_s20 }
 0x9ac   :  { %v1710_v58 = vpop.eup %1709 }
 0x9ad   :  { %v721_v59 = vadd.f32 1.0, %v1710_v58 }
 0x9af   :  { %1711 = vrcp.f32 %v721_v59 }
 0x9bc   :  { %v1712_v60 = vpop.eup %1711 }
 0x9bd   :  { %v736_v5 = vsub.f32 1.0, %v1712_v60 }
 0xa0f   :  { %v727_v61 = vpop.permute.xlu1 %726 }
 0xa10   :  { %v729_v62 = vmul.f32 %v1712_v60, %v727_v61 }
 0xa12   :  { %731 = vrot.lane.b32.xlu0 %v729_v62, %s1771_s6 }
 0xa1c   :  { %v751_v2 = vpop.permute.xlu1 %750 }
 0xa1d   :  { %vm752_vm14 = vcmp.eq.s32.totalorder %v751_v2, 1 }
 0xa20   :  { %v743_v4 = vpop.permute.xlu1 %742 }
 0xa21   :  { %v745_v11 = vmul.f32 %v1712_v60, %v743_v4 }
 0xa84   :  { %v732_v63 = vpop.permute.xlu0 %731 }
 0xa85   :  { %v734_v0 = vadd.f32 %v732_v63, %v643_v55 }
 0xa87   :  { %1713 = vtanh.f32 %v734_v0 }
 0xa94   :  { %v1714_v1 = vpop.eup %1713 }
 0xa95   :  { %738 = vrot.lane.b32.xlu0 %v1714_v1, %s1774_s21 }
 0xb07   :  { %v739_v6 = vpop.permute.xlu0 %738 }
 0xb08   :  { %v741_v12 = vmul.f32 %v739_v6, %v736_v5  ;;  %v1099_v6 = vsel %vm1098_vm4, 1, %v1772_v17 }
 0xb0a   :  { %v746_v13 = vadd.f32 %v745_v11, %v741_v12  ;;  %v994_v11 = vld [vmem:[#allocation2 + $0x30] sm:$0xff] }
 0xb0c   :  { %v753_v14 = vsel %vm752_vm14, %v746_v13, %v743_v4 }
 0xb0d   :  { %755 = vrot.lane.b32.xlu0 %v753_v14, %s1774_s21 }
 0xb7f   :  { %v756_v15 = vpop.permute.xlu0 %755 }
 0xb80   :  { %758 = vst.msk [vmem:[#allocation3] sm:$0xff] %vm134_vm5, %v756_v15 }
 0xb87   :  { %v759_v16 = vld [vmem:[#allocation3] sm:$0xff] }
 0xb88   :  { %1629 = vmatmul.mubr.msk.f32.vlgmr.msra.gmra.mxu1 %vm134_vm5, %v759_v16 }
 0xb89   :  { %1643 = vmatpush3.msra.mxu1 %v1871_v7  ;;  %1650 = vmatprep.mubr.msk.f32.mxu1 %vm1770_vm1, %v1769_v3 }
 0xb8a   :  { %1644 = vmatprep.subr.mxu1 %v1769_v3 }
 0xb8b   :  { %1645 = vmatpush3.msra.mxu1 %v1877_v8 }
 0xb8c   :  { %1646 = vmatprep.subr.mxu1 %v1769_v3 }
 0xb8d   :  { %1647 = vmatpush3.msra.mxu1 %v1884_v9 }
 0xb8e   :  { %1648 = vmatprep.subr.mxu1 %v1769_v3 }
 0xb8f   :  { %1649 = vmatpush3.msra.mxu1 %v1893_v10 }
 0xb90   :  { %1664 = vmatprep.subr.mxu1 %v1769_v3 }
 0xc48   :  { %v830_v19 = vpop.f32.mrf.mxu1 }
 0xc49   :  { %v841_v20 = vadd.f32 %v830_v19, %v1924_v18  ;;  %v834_v24 = vadd.f32 %v830_v19, %v760_v23 }
 0xc4a   :  { %v1630_v21 = vpop.f32.mrf.mxu1 }
 0xc4b   :  { %843 = vrot.lane.b32.xlu1 %v841_v20, %s1771_s6  ;;  %v1484_v25 = vmul.f32 -1.442695, %v834_v24 }
 0xc4d   :  { %1715 = vpow2.f32 %v1484_v25 }
 0xc4f   :  { %867 = vperm.xlu1 %1689, %v865_v22  }
 0xc53   :  { %859 = vrot.lane.b32.xlu1 %v759_v16, %s1773_s20 }
 0xc5a   :  { %v1716_v26 = vpop.eup %1715 }
 0xc5b   :  { %v838_v28 = vadd.f32 1.0, %v1716_v26 }
 0xc5d   :  { %1717 = vrcp.f32 %v838_v28 }
 0xc6a   :  { %v1718_v29 = vpop.eup %1717 }
 0xc6b   :  { %v853_v37 = vsub.f32 1.0, %v1718_v29 }
 0xcbd   :  { %v844_v30 = vpop.permute.xlu1 %843 }
 0xcbe   :  { %v846_v31 = vmul.f32 %v1718_v29, %v844_v30 }
 0xcc0   :  { %848 = vrot.lane.b32.xlu0 %v846_v31, %s1771_s6 }
 0xcca   :  { %v868_v35 = vpop.permute.xlu1 %867 }
 0xccb   :  { %vm869_vm0 = vcmp.eq.s32.totalorder %v868_v35, 1 }
 0xcce   :  { %v860_v36 = vpop.permute.xlu1 %859 }
 0xccf   :  { %v862_v39 = vmul.f32 %v1718_v29, %v860_v36 }
 0xd32   :  { %v849_v32 = vpop.permute.xlu0 %848 }
 0xd33   :  { %v851_v33 = vadd.f32 %v849_v32, %v760_v23 }
 0xd35   :  { %1719 = vtanh.f32 %v851_v33 }
 0xd42   :  { %v1720_v34 = vpop.eup %1719 }
 0xd43   :  { %855 = vrot.lane.b32.xlu0 %v1720_v34, %s1774_s21 }
 0xdb5   :  { %v856_v38 = vpop.permute.xlu0 %855 }
 0xdb6   :  { %v858_v40 = vmul.f32 %v856_v38, %v853_v37  ;;  %v1216_v38 = vsel %vm1215_vm7, 1, %v1772_v17 }
 0xdb8   :  { %v863_v41 = vadd.f32 %v862_v39, %v858_v40  ;;  %v1111_v39 = vld [vmem:[#allocation2 + $0x38] sm:$0xff] }
 0xdba   :  { %v870_v42 = vsel %vm869_vm0, %v863_v41, %v860_v36 }
 0xdbb   :  { %872 = vrot.lane.b32.xlu0 %v870_v42, %s1774_s21 }
 0xe2d   :  { %v873_v43 = vpop.permute.xlu0 %872 }
 0xe2e   :  { %875 = vst.msk [vmem:[#allocation3] sm:$0xff] %vm134_vm5, %v873_v43 }
 0xe35   :  { %v876_v44 = vld [vmem:[#allocation3] sm:$0xff] }
 0xe36   :  { %1640 = vmatmul.mubr.msk.f32.vlgmr.msra.gmra.mxu0 %vm134_vm5, %v876_v44 }
 0xe37   :  { %1654 = vmatpush3.msra.mxu0 %v1871_v7  ;;  %1661 = vmatprep.mubr.msk.f32.mxu0 %vm1770_vm1, %v1769_v3 }
 0xe38   :  { %1655 = vmatprep.subr.mxu0 %v1769_v3 }
 0xe39   :  { %1656 = vmatpush3.msra.mxu0 %v1877_v8  ;;  %v982_v8 = vsel %vm981_vm2, 1, %v1772_v17 }
 0xe3a   :  { %1657 = vmatprep.subr.mxu0 %v1769_v3 }
 0xe3b   :  { %1658 = vmatpush3.msra.mxu0 %v1884_v9  ;;  %v877_v9 = vld [vmem:[#allocation2 + $0x28] sm:$0xff] }
 0xe3c   :  { %1659 = vmatprep.subr.mxu0 %v1769_v3 }
 0xe3d   :  { %1660 = vmatpush3.msra.mxu0 %v1893_v10 }
 0xe3e   :  { %1675 = vmatprep.subr.mxu0 %v1769_v3 }
 0xef6   :  { %v947_v45 = vpop.f32.mrf.mxu0 }
 0xef7   :  { %v958_v7 = vadd.f32 %v947_v45, %v1924_v18  ;;  %v951_v47 = vadd.f32 %v947_v45, %v877_v9 }
 0xef8   :  { %v1641_v46 = vpop.f32.mrf.mxu0 }
 0xef9   :  { %960 = vrot.lane.b32.xlu1 %v958_v7, %s1771_s6  ;;  %v1486_v48 = vmul.f32 -1.442695, %v951_v47  ;;  %v1229_v47 = vld [vmem:[%s2133_s8 + $0x8] sm:$0xff] }
 0xefb   :  { %1721 = vpow2.f32 %v1486_v48  ;;  %v1228_v48 = vld [vmem:[%s2133_s8] sm:$0xff] }
 0xefd   :  { %984 = vperm.xlu1 %1689, %v982_v8   ;;  %v1231_v8 = vld [vmem:[%s2133_s8 + $0x18] sm:$0xff] }
 0xf01   :  { %976 = vrot.lane.b32.xlu1 %v876_v44, %s1773_s20 }
 0xf08   :  { %v1722_v10 = vpop.eup %1721 }
 0xf09   :  { %v955_v49 = vadd.f32 1.0, %v1722_v10 }
 0xf0b   :  { %1723 = vrcp.f32 %v955_v49 }
 0xf18   :  { %v1724_v50 = vpop.eup %1723 }
 0xf19   :  { %v970_v58 = vsub.f32 1.0, %v1724_v50 }
 0xf6b   :  { %v961_v51 = vpop.permute.xlu1 %960 }
 0xf6c   :  { %v963_v52 = vmul.f32 %v1724_v50, %v961_v51 }
 0xf6e   :  { %965 = vrot.lane.b32.xlu0 %v963_v52, %s1771_s6 }
 0xf78   :  { %v985_v56 = vpop.permute.xlu1 %984 }
 0xf79   :  { %vm986_vm3 = vcmp.eq.s32.totalorder %v985_v56, 1 }
 0xf7c   :  { %v977_v57 = vpop.permute.xlu1 %976 }
 0xf7d   :  { %v979_v60 = vmul.f32 %v1724_v50, %v977_v57 }
 0xfe0   :  { %v966_v53 = vpop.permute.xlu0 %965 }
 0xfe1   :  { %v968_v54 = vadd.f32 %v966_v53, %v877_v9  ;;  %v1230_v9 = vld [vmem:[%s2133_s8 + $0x10] sm:$0xff] }
 0xfe3   :  { %1725 = vtanh.f32 %v968_v54 }
 0xff0   :  { %v1726_v55 = vpop.eup %1725 }
 0xff1   :  { %972 = vrot.lane.b32.xlu0 %v1726_v55, %s1774_s21 }
0x1063   :  { %v973_v59 = vpop.permute.xlu0 %972 }
0x1064   :  { %v975_v61 = vmul.f32 %v973_v59, %v970_v58  ;;  %v1319_v58 = vld [vmem:[%s2135_s10] sm:$0xff] }
0x1065   :  { %v1491_v59 = vld [vmem:[%s2134_s9] ss:$0 sm:$0xff]  ;;  %s1775_s9 = smov [#allocation7]  }
0x1066   :  { %v980_v62 = vadd.f32 %v979_v60, %v975_v61 }
0x1068   :  { %v987_v63 = vsel %vm986_vm3, %v980_v62, %v977_v57  ;;  %v1320_v57 = vld [vmem:[%s2135_s10 + $0x8] sm:$0xff]  ;;  %s1455_s10 = sshll.u32 %s1775_s9, 4  ;;  %s1456_s10 = int_to_ptr.vmem [resolvable:$true] %s1455_s10 }
0x1069   :  { %989 = vrot.lane.b32.xlu0 %v987_v63, %s1774_s21  ;;  %p1752_p1 = scmp.lt.s32.totalorder %s1456_s10, %s1456_s10 }
0x10db   :  { %v990_v0 = vpop.permute.xlu0 %989 }
0x10dc   :  { %992 = vst.msk [vmem:[#allocation3] sm:$0xff] %vm134_vm5, %v990_v0 }
0x10e3   :  { %v993_v1 = vld [vmem:[#allocation3] sm:$0xff] }
0x10e4   :  { %1651 = vmatmul.mubr.msk.f32.vlgmr.msra.gmra.mxu1 %vm134_vm5, %v993_v1 }
0x10e5   :  { %1672 = vmatprep.mubr.msk.f32.mxu1 %vm1770_vm1, %v1769_v3  ;;  %1665 = vmatpush3.msra.mxu1 %v1231_v8 }
0x10e6   :  { %1666 = vmatprep.subr.mxu1 %v1769_v3 }
0x10e7   :  { %1667 = vmatpush3.msra.mxu1 %v1230_v9 }
0x10e8   :  { %1668 = vmatprep.subr.mxu1 %v1769_v3 }
0x10e9   :  { %1669 = vmatpush3.msra.mxu1 %v1229_v47 }
0x10ea   :  { %1670 = vmatprep.subr.mxu1 %v1769_v3 }
0x10eb   :  { %1671 = vmatpush3.msra.mxu1 %v1228_v48 }
0x11a4   :  { %v1064_v2 = vpop.f32.mrf.mxu1 }
0x11a5   :  { %v1075_v4 = vadd.f32 %v1064_v2, %v1924_v18  ;;  %v1068_v12 = vadd.f32 %v1064_v2, %v994_v11 }
0x11a6   :  { %v1652_v5 = vpop.f32.mrf.mxu1 }
0x11a7   :  { %1077 = vrot.lane.b32.xlu1 %v1075_v4, %s1771_s6  ;;  %v1488_v13 = vmul.f32 -1.442695, %v1068_v12  ;;  %v1494_v5 = vld [vmem:[#allocation6] ss:$0 sm:$0xff] }
0x11a9   :  { %1727 = vpow2.f32 %v1488_v13 }
0x11ab   :  { %1101 = vperm.xlu1 %1689, %v1099_v6  }
0x11af   :  { %1093 = vrot.lane.b32.xlu1 %v993_v1, %s1773_s20 }
0x11b6   :  { %v1728_v14 = vpop.eup %1727 }
0x11b7   :  { %v1072_v15 = vadd.f32 1.0, %v1728_v14 }
0x11b9   :  { %1729 = vrcp.f32 %v1072_v15 }
0x11c6   :  { %v1730_v16 = vpop.eup %1729 }
0x11c7   :  { %v1087_v26 = vsub.f32 1.0, %v1730_v16 }
0x1219   :  { %v1078_v19 = vpop.permute.xlu1 %1077 }
0x121a   :  { %v1080_v20 = vmul.f32 %v1730_v16, %v1078_v19 }
0x121c   :  { %1082 = vrot.lane.b32.xlu0 %v1080_v20, %s1771_s6 }
0x1226   :  { %v1102_v24 = vpop.permute.xlu1 %1101 }
0x1227   :  { %vm1103_vm6 = vcmp.eq.s32.totalorder %v1102_v24, 1 }
0x122a   :  { %v1094_v25 = vpop.permute.xlu1 %1093 }
0x122b   :  { %v1096_v29 = vmul.f32 %v1730_v16, %v1094_v25 }
0x128e   :  { %v1083_v21 = vpop.permute.xlu0 %1082 }
0x128f   :  { %v1085_v22 = vadd.f32 %v1083_v21, %v994_v11 }
0x1291   :  { %1731 = vtanh.f32 %v1085_v22 }
0x129e   :  { %v1732_v23 = vpop.eup %1731 }
0x129f   :  { %1089 = vrot.lane.b32.xlu0 %v1732_v23, %s1774_s21 }
0x1311   :  { %v1090_v28 = vpop.permute.xlu0 %1089 }
0x1312   :  { %v1092_v30 = vmul.f32 %v1090_v28, %v1087_v26 }
0x1314   :  { %v1097_v31 = vadd.f32 %v1096_v29, %v1092_v30 }
0x1316   :  { %v1104_v32 = vsel %vm1103_vm6, %v1097_v31, %v1094_v25 }
0x1317   :  { %1106 = vrot.lane.b32.xlu0 %v1104_v32, %s1774_s21 }
0x1389   :  { %v1107_v33 = vpop.permute.xlu0 %1106 }
0x138a   :  { %1109 = vst.msk [vmem:[#allocation3] sm:$0xff] %vm134_vm5, %v1107_v33 }
0x1391   :  { %v1110_v34 = vld [vmem:[#allocation3] sm:$0xff] }
0x1392   :  { %1662 = vmatmul.mubr.msk.f32.vlgmr.msra.gmra.mxu0 %vm134_vm5, %v1110_v34 }
0x1393   :  { %1679 = vmatprep.mubr.msk.f32.mxu0 %vm1770_vm1, %v1769_v3  ;;  %1676 = vmatpush3.msra.mxu0 %v1320_v57 }
0x1394   :  { %1677 = vmatprep.subr.mxu0 %v1769_v3 }
0x1395   :  { %1678 = vmatpush3.msra.mxu0 %v1319_v58 }
0x1452   :  { %v1181_v35 = vpop.f32.mrf.mxu0 }
0x1453   :  { %v1192_v36 = vadd.f32 %v1181_v35, %v1924_v18  ;;  %v1185_v40 = vadd.f32 %v1181_v35, %v1111_v39 }
0x1454   :  { %v1663_v37 = vpop.f32.mrf.mxu0 }
0x1455   :  { %1194 = vrot.lane.b32.xlu1 %v1192_v36, %s1771_s6  ;;  %v1490_v41 = vmul.f32 -1.442695, %v1185_v40 }
0x1457   :  { %1733 = vpow2.f32 %v1490_v41 }
0x1459   :  { %1218 = vperm.xlu1 %1689, %v1216_v38  }
0x145d   :  { %1210 = vrot.lane.b32.xlu1 %v1110_v34, %s1773_s20  ;;  %s1747_s20 = scalar_lea.vmem %s1456_s10, 16 }
0x145e   :  { %p1748_p0 = scmp.ne.s32.totalorder %s1456_s10, %s1747_s20 }
0x1464   :  { %v1734_v42 = vpop.eup %1733 }
0x1465   :  { %v1189_v43 = vadd.f32 1.0, %v1734_v42 }
0x1467   :  { %1735 = vrcp.f32 %v1189_v43 }
0x1474   :  { %v1736_v44 = vpop.eup %1735 }
0x1475   :  { %v1204_v49 = vsub.f32 1.0, %v1736_v44 }
0x14c7   :  { %v1195_v45 = vpop.permute.xlu1 %1194 }
0x14c8   :  { %v1197_v18 = vmul.f32 %v1736_v44, %v1195_v45 }
0x14ca   :  { %1199 = vrot.lane.b32.xlu0 %v1197_v18, %s1771_s6 }
0x14d4   :  { %v1219_v17 = vpop.permute.xlu1 %1218 }
0x14d5   :  { %vm1220_vm1 = vcmp.eq.s32.totalorder %v1219_v17, 1 }
0x14d8   :  { %v1211_v10 = vpop.permute.xlu1 %1210 }
0x14d9   :  { %v1213_v51 = vmul.f32 %v1736_v44, %v1211_v10 }
0x153c   :  { %v1200_v27 = vpop.permute.xlu0 %1199 }
0x153d   :  { %v1202_v7 = vadd.f32 %v1200_v27, %v1111_v39 }
0x153f   :  { %1737 = vtanh.f32 %v1202_v7 }
0x154c   :  { %v1738_v46 = vpop.eup %1737 }
0x154d   :  { %1206 = vrot.lane.b32.xlu0 %v1738_v46, %s1774_s21 }
0x15bf   :  { %v1207_v50 = vpop.permute.xlu0 %1206 }
0x15c0   :  { %v1209_v52 = vmul.f32 %v1207_v50, %v1204_v49 }
0x15c2   :  { %v1214_v53 = vadd.f32 %v1213_v51, %v1209_v52 }
0x15c4   :  { %v1221_v54 = vsel %vm1220_vm1, %v1214_v53, %v1211_v10 }
0x15c5   :  { %1223 = vrot.lane.b32.xlu0 %v1221_v54, %s1774_s21  ;;  %s1751_s21 = scalar_lea.vmem %s1456_s10, 32 }
0x15c6   :  { %p1753_p2 = scmp.lt.s32.totalorder %s1751_s21, %s1747_s20 }
0x15c8   :  { %p1754_p3 = por %p1753_p2, %p1752_p1 }
0x15ca   :  { %p1755_p4 = pnand %p1754_p3, %p1748_p0 }
0x1637   :  { %v1224_v55 = vpop.permute.xlu0 %1223 }
0x1638   :  { %1226 = vst.msk [vmem:[#allocation3] sm:$0xff] %vm134_vm5, %v1224_v55 }
0x163f   :  { %v1227_v56 = vld [vmem:[#allocation3] sm:$0xff] }
0x1640   :  { %1673 = vmatmul.mubr.msk.f32.vlgmr.msra.gmra.mxu1 %vm134_vm5, %v1227_v56 }
0x1700   :  { %v1308_v60 = vpop.f32.mrf.mxu1 }
0x1701   :  { %v1309_v61 = vadd.f32 %v1491_v59, %v1308_v60 }
0x1702   :  { %v1674_v62 = vpop.f32.mrf.mxu1 }
0x1703   :  { %v1313_v63 = vmul.f32 1.442695, %v1309_v61  ;;  %vm1312_vm5 = vcmp.gt.f32.partialorder %v1309_v61, 0.0 }
0x1705   :  { %1739 = vpow2.f32 %v1313_v63 }
0x1712   :  { %v1740_v0 = vpop.eup %1739 }
0x1713   :  { %v1493_v1 = vadd.f32 -1.0, %v1740_v0 }
0x1715   :  { %v1316_v2 = vmul.f32 1.6732632, %v1493_v1 }
0x1717   :  { %v1317_v4 = vsel %vm1312_vm5, %v1309_v61, %v1316_v2 }
0x1718   :  { %v1318_v3 = vmul.f32 1.050701, %v1317_v4 }
0x171a   :  { %1680 = vmatmul.mubr.msk.f32.vlgmr.msra.gmra.mxu0 %vm1328_vm8, %v1318_v3 }
0x17da   :  { %v1398_v6 = vpop.f32.mrf.mxu0 }
0x17db   :  { %v1399_v11 = vadd.f32 %v1494_v5, %v1398_v6 }
0x17dc   :  { %v1681_v12 = vpop.f32.mrf.mxu0 }
0x17dd   :  { %v1403_v13 = vmul.f32 1.442695, %v1399_v11  ;;  %vm1402_vm9 = vcmp.gt.f32.partialorder %v1399_v11, 0.0 }
0x17df   :  { %1741 = vpow2.f32 %v1403_v13 }
0x17ec   :  { %v1742_v14 = vpop.eup %1741 }
0x17ed   :  { %v1496_v15 = vadd.f32 -1.0, %v1742_v14 }
0x17ef   :  { %v1406_v16 = vmul.f32 1.6732632, %v1496_v15 }
0x17f1   :  { %v1407_v19 = vsel %vm1402_vm9, %v1399_v11, %v1406_v16 }
0x17f2   :  { %v1497_v20 = vmul.f32 -1.050701, %v1407_v19 }
0x17f4   :  { %v1410_v21 = vmul.f32 1.442695, %v1497_v20 }
0x17f6   :  { %1743 = vpow2.f32 %v1410_v21 }
0x1803   :  { %v1744_v22 = vpop.eup %1743 }
0x1804   :  { %v1412_v23 = vadd.f32 1.0, %v1744_v22 }
0x1806   :  { %1745 = vrcp.f32 %v1412_v23 }
0x1813   :  { %v1746_v24 = vpop.eup %1745 }
0x1814   :  { %1415 = vxpose.xlu1.b32.start.end [1/1] (short) (narrow) %v1746_v24, 8 }
0x1890   :  { %v1431_v25 = vpop.trf.xlu1 }
0x1891   :  { %1448 = vst.msk [vmem:[#allocation7] sm:$0x1] %vm1447_vm10, %v1431_v25 }
0x1892   :  { %1758 = shalt.err (!%p1755_p4)
}
0x1893   :  { %1458 = dma.vmem_to_hbm [thread:$0]  %s1456_s10, 16, %s2137_s12, [#allocation8]  }
0x1894   :  { %1767 = dma.done.wait [#allocation8], 16  }
0x1895   :  { %1768 = vsyncadd [#allocation8], 4294967280 }
0x1896   :  { %1462 = vsyncpa [#allocation8], 1 }

</bundles_post_ra>
